<compile_context>
chip_gen: v7x
topology: tpu7x:2x2x1
jax: 0.10.0
libtpu: 0.0.40
codegen_flags: <defaults>
</compile_context>

<pallas_src>
import jax
import jax.numpy as jnp
from jax import lax
from jax.experimental import pallas as pl
from jax.experimental.pallas import tpu as pltpu


def _round_up(v, m):
    return -(-v // m) * m


def _cdiv(a, b):
    return -(-a // b)


# ---------------------------------------------------------------------------
# Kernels
# ---------------------------------------------------------------------------
def _stem_kernel(p_ref, w_ref, b_ref, o_ref):
    """relu(p @ w + b).  p: (TR, 27) bf16 im2col patches, w: (27, C) bf16 with
    BN scale folded in, b: (1, C) f32, o: (TR, C) bf16 (true channel count)."""
    y = jnp.dot(p_ref[...], w_ref[...], preferred_element_type=jnp.float32)
    o_ref[...] = jnp.maximum(y + b_ref[...], 0.0).astype(o_ref.dtype)


def _dsconv_kernel(xm_ref, xh_ref, wdw_ref, bdw_ref, wpw_ref, bpw_ref, o_ref):
    """Fused _DSConv on one strip of TOH output rows.

    Input layout (built for free by a metadata-only reshape in the wrapper):
      xm: (TOH, 2, WC, 2C)  rows are (j, q) with padded row r = 2*j + q,
                            lanes are (p, c) with padded col w = 2*jc + p.
      xh: (1, 1, WC, 2C)    halo row (j = TOH*(t+1), q = 0).
    All 9 depthwise taps are therefore unit-stride static slices; the depthwise
    conv runs on the VPU (broadcast multiply-adds, f32 acc), the pointwise 1x1
    on the MXU.  The intermediate activation never leaves VMEM.
    """
    toh, ow, cout = o_ref.shape
    c = wpw_ref.shape[0]

    xm = xm_ref[...]
    r0 = xm[:, 0]                            # padded rows 2*oh       (TOH, WC, 2C)
    r1 = xm[:, 1]                            # padded rows 2*oh + 1
    halo = xh_ref[...][0]                    # (1, WC, 2C)
    if toh > 1:
        r2 = jnp.concatenate([r0[1:], halo], axis=0)   # padded rows 2*oh + 2
    else:
        r2 = halo

    wdw = wdw_ref[...]                       # (9, C) f32, BN1 scale folded in
    acc = jnp.zeros((toh, ow, c), jnp.float32)
    for kh, rows in enumerate((r0, r1, r2)):
        for kw in range(3):
            j0 = kw // 2                     # column offset of the tap
            p0 = (kw % 2) * c                # lane plane: even / odd columns
            tap = rows[:, j0:j0 + ow, p0:p0 + c]
            acc = acc + tap.astype(jnp.float32) * wdw[3 * kh + kw, :]

    t = jnp.maximum(acc + bdw_ref[...], 0.0).astype(wpw_ref.dtype)   # dw + BN + ReLU
    y = jnp.dot(t.reshape(toh * ow, c), wpw_ref[...],
                preferred_element_type=jnp.float32)                  # pointwise 1x1
    y = jnp.maximum(y + bpw_ref[...], 0.0)                           # BN + ReLU
    o_ref[...] = y.reshape(toh, ow, cout).astype(o_ref.dtype)


# ---------------------------------------------------------------------------
# Wrapper-side helpers (BN folding, tiling, VMEM sizing)
# ---------------------------------------------------------------------------
def _bn_fold(gamma, beta, mean, var, eps):
    scale = gamma.astype(jnp.float32) / jnp.sqrt(var.astype(jnp.float32) + eps)
    bias = beta.astype(jnp.float32) - mean.astype(jnp.float32) * scale
    return scale, bias


def _block_vmem_bytes(shape, itemsize):
    s = list(shape)
    s[-1] = _round_up(s[-1], 128)
    if len(s) >= 2:
        s[-2] = _round_up(s[-2], 16)
    n = 1
    for d in s:
        n *= d
    return n * itemsize


def _vmem_limit(*block_bytes):
    # Sized from actual block bytes (double-buffered IO + in-kernel temporaries),
    # clamped so there is headroom on v7x's 64 MiB VMEM.
    need = 4 * int(sum(block_bytes)) + (8 << 20)
    return int(min(48 << 20, max(24 << 20, need)))


def _pick_row_tile(rows, cap=4096, align=256):
    # Biggest tile <= cap, 256-aligned (bf16 sublane packing, full MXU passes),
    # while keeping >= 2 grid steps when rows permit (v7x megacore).
    tr = _round_up(max(1, _cdiv(rows, 2)), align)
    return max(align, min(cap, tr))


def _extract_patches(x_nhwc, ksize, stride):
    """Tap-major, channel-minor im2col, no padding (stage 1 only)."""
    n, h, w, c = x_nhwc.shape
    oh = (h - ksize) // stride + 1
    ow = (w - ksize) // stride + 1
    cols = []
    for kh in range(ksize):
        for kw in range(ksize):
            cols.append(x_nhwc[:, kh:kh + (oh - 1) * stride + 1:stride,
                                  kw:kw + (ow - 1) * stride + 1:stride, :])
    p = jnp.concatenate(cols, axis=-1)                     # (N, OH, OW, k*k*C)
    return p.reshape(n * oh * ow, ksize * ksize * c), oh, ow


# ---------------------------------------------------------------------------
# Stage drivers
# ---------------------------------------------------------------------------
def _stem_stage(x_nhwc, w_oihw, bn, eps):
    """_Conv2D(3, dsc1, 3, stride=2, padding=0) + BN + ReLU."""
    n = x_nhwc.shape[0]
    cin = x_nhwc.shape[-1]
    cout = w_oihw.shape[0]

    scale, bias = _bn_fold(*bn, eps)
    wmat = jnp.transpose(w_oihw, (2, 3, 1, 0)).reshape(9 * cin, cout)
    wmat = (wmat.astype(jnp.float32) * scale[None, :]).astype(jnp.bfloat16)
    bvec = bias.reshape(1, cout).astype(jnp.float32)

    patches, oh, ow = _extract_patches(x_nhwc, 3, 2)
    rows, k = patches.shape
    tr = _pick_row_tile(rows, cap=4096, align=256)
    rows_pad = _round_up(rows, tr)
    if rows_pad != rows:
        patches = jnp.pad(patches, ((0, rows_pad - rows), (0, 0)))

    io_bytes = (_block_vmem_bytes((tr, k), 2) + _block_vmem_bytes((tr, cout), 2))
    cost = pl.CostEstimate(
        flops=int(2 * rows_pad * k * cout),
        transcendentals=0,
        bytes_accessed=int(patches.size * 2 + wmat.size * 2 + bvec.size * 4
                           + rows_pad * cout * 2))

    out = pl.pallas_call(
        _stem_kernel,
        out_shape=jax.ShapeDtypeStruct((rows_pad, cout), jnp.bfloat16),
        grid_spec=pltpu.PrefetchScalarGridSpec(
            num_scalar_prefetch=0,
            grid=(rows_pad // tr,),
            in_specs=[pl.BlockSpec((tr, k), lambda i: (i, 0)),
                      pl.BlockSpec((9 * cin, cout), lambda i: (0, 0)),
                      pl.BlockSpec((1, cout), lambda i: (0, 0))],
            out_specs=pl.BlockSpec((tr, cout), lambda i: (i, 0))),
        compiler_params=pltpu.CompilerParams(
            dimension_semantics=("parallel",),
            vmem_limit_bytes=_vmem_limit(io_bytes)),
        cost_estimate=cost,
    )(patches, wmat, bvec)
    return out[:rows].reshape(n, oh, ow, cout)


def _dsconv_stage(y_nhwc, dw_w, pw_w, bn1, bn2, eps, target_pix=2048):
    """One fused _DSConv block: dw 3x3 s2 p1 + BN + ReLU + pw 1x1 + BN + ReLU."""
    n, h, w, c = y_nhwc.shape
    cout = pw_w.shape[0]
    oh = (h - 1) // 2 + 1
    ow = (w - 1) // 2 + 1

    s_dw, b_dw = _bn_fold(*bn1, eps)
    s_pw, b_pw = _bn_fold(*bn2, eps)
    wdw = jnp.transpose(dw_w[:, 0, :, :], (1, 2, 0)).reshape(9, c)
    wdw = wdw.astype(jnp.float32) * s_dw[None, :]                     # (9, C)  f32
    bdw = b_dw.reshape(1, c).astype(jnp.float32)
    wpw = jnp.transpose(pw_w[:, :, 0, 0], (1, 0)).astype(jnp.float32) * s_pw[None, :]
    wpw = wpw.astype(jnp.bfloat16)                                    # (C, Cout)
    bpw = b_pw.reshape(1, cout).astype(jnp.float32)

    # Output-row tile: ~target_pix output pixels per grid step, >= 2 steps total.
    toh = max(1, min(oh, target_pix // max(ow, 1)))
    if n * _cdiv(oh, toh) < 2 and oh > 1:
        toh = _cdiv(oh, 2)
    oh_pad = _round_up(oh, toh)
    n_t = oh_pad // toh
    hp2 = oh_pad + toh            # one extra row block keeps the last halo in-bounds
    wc = _round_up(w + 2, 8) // 2

    # Conv padding (1 zero row/col top-left) + alignment padding, then a
    # metadata-only reshape into the (row-pair, col-pair->lanes) split layout.
    xp = jnp.pad(y_nhwc, ((0, 0), (1, 2 * hp2 - 1 - h), (1, 2 * wc - 1 - w), (0, 0)))
    xp = xp.reshape(n * hp2, 2, wc, 2 * c)

    bpi = hp2 // toh              # row-pair blocks per image for the main spec
    main_spec = pl.BlockSpec((toh, 2, wc, 2 * c),
                             lambda b, t: (b * bpi + t, 0, 0, 0))
    halo_spec = pl.BlockSpec((1, 1, wc, 2 * c),
                             lambda b, t: (b * hp2 + toh * (t + 1), 0, 0, 0))

    def full(shape):
        return pl.BlockSpec(shape, lambda b, t: (0,) * len(shape))

    io_bytes = (_block_vmem_bytes((toh, 2, wc, 2 * c), 2)
                + _block_vmem_bytes((1, 1, wc, 2 * c), 2)
                + _block_vmem_bytes((toh, ow, cout), 2)
                + _block_vmem_bytes((toh, ow, c), 4))       # f32 accumulator

    cost = pl.CostEstimate(
        flops=int(2 * n * oh_pad * ow * (9 * c + c * cout)),
        transcendentals=0,
        bytes_accessed=int(xp.size * 2 + n * oh_pad * ow * cout * 2
                           + wdw.size * 4 + wpw.size * 2 + (c + cout) * 4))

    out = pl.pallas_call(
        _dsconv_kernel,
        out_shape=jax.ShapeDtypeStruct((n * oh_pad, ow, cout), jnp.bfloat16),
        grid_spec=pltpu.PrefetchScalarGridSpec(
            num_scalar_prefetch=0,
            grid=(n, n_t),
            in_specs=[main_spec, halo_spec,
                      full((9, c)), full((1, c)),
                      full((c, cout)), full((1, cout))],
            out_specs=pl.BlockSpec((toh, ow, cout),
                                   lambda b, t: (b * n_t + t, 0, 0))),
        compiler_params=pltpu.CompilerParams(
            dimension_semantics=("parallel", "parallel"),
            vmem_limit_bytes=_vmem_limit(io_bytes)),
        cost_estimate=cost,
    )(xp, xp, wdw, bdw, wpw, bpw)

    # Slice off the padded (garbage) output rows before any reuse.
    return out.reshape(n, oh_pad, ow, cout)[:, :oh]


# ---------------------------------------------------------------------------
# Full LearningToDownSample forward (NCHW in / NCHW out, PyTorch contract)
# ---------------------------------------------------------------------------
def learning_to_downsample(x_nchw, params, eps=1e-5):
    x = jnp.transpose(x_nchw, (0, 2, 3, 1)).astype(jnp.bfloat16)   # NCHW -> NHWC once

    y = _stem_stage(
        x, params["w1"],
        (params["bn1_g"], params["bn1_b"], params["bn1_m"], params["bn1_v"]), eps)

    for blk in ("dsc1", "dsc2"):
        y = _dsconv_stage(
            y, params[f"{blk}_dw_w"], params[f"{blk}_pw_w"],
            (params[f"{blk}_bn1_g"], params[f"{blk}_bn1_b"],
             params[f"{blk}_bn1_m"], params[f"{blk}_bn1_v"]),
            (params[f"{blk}_bn2_g"], params[f"{blk}_bn2_b"],
             params[f"{blk}_bn2_m"], params[f"{blk}_bn2_v"]),
            eps)

    # NHWC -> NCHW / f32 to match the PyTorch contract (see TODO at top of file).
    return jnp.transpose(y, (0, 3, 1, 2)).astype(jnp.float32)


# ---------------------------------------------------------------------------
# Pure-XLA reference (mirrors the kernel's bf16 quantization points).
# ---------------------------------------------------------------------------
def _reference(x_nchw, params, eps=1e-5):
    def q(a):
        return a.astype(jnp.bfloat16).astype(jnp.float32)

    def stage(x, w, g, b, m, v, stride, padding, groups=1):
        y = lax.conv_general_dilated(
            x, q(w), (stride, stride), [(padding, padding)] * 2,
            dimension_numbers=("NCHW", "OIHW", "NCHW"),
            feature_group_count=groups)
        s = g / jnp.sqrt(v + eps)
        y = y * s[None, :, None, None] + (b - m * s)[None, :, None, None]
        return q(jnp.maximum(y, 0.0))

    y = stage(q(x_nchw), params["w1"], params["bn1_g"], params["bn1_b"],
              params["bn1_m"], params["bn1_v"], 2, 0)
    for blk in ("dsc1", "dsc2"):
        dw = params[f"{blk}_dw_w"]
        y = stage(y, dw, params[f"{blk}_bn1_g"], params[f"{blk}_bn1_b"],
                  params[f"{blk}_bn1_m"], params[f"{blk}_bn1_v"], 2, 1,
                  groups=dw.shape[0])
        y = stage(y, params[f"{blk}_pw_w"], params[f"{blk}_bn2_g"],
                  params[f"{blk}_bn2_b"], params[f"{blk}_bn2_m"],
                  params[f"{blk}_bn2_v"], 1, 0)
    return y


if __name__ == "__main__":
    N, H, W = 2, 32, 32
    DSC1, DSC2, DSC2OUT = 8, 16, 32

    key = jax.random.PRNGKey(0)
    keys = iter(jax.random.split(key, 32))

    def conv_w(shape):
        return 0.1 * jax.random.normal(next(keys), shape, dtype=jnp.float32)

    def add_bn(prefix, c, p):
        p[f"{prefix}_g"] = 0.5 + jax.random.uniform(next(keys), (c,), dtype=jnp.float32)
        p[f"{prefix}_b"] = 0.1 * jax.random.normal(next(keys), (c,), dtype=jnp.float32)
        p[f"{prefix}_m"] = 0.1 * jax.random.normal(next(keys), (c,), dtype=jnp.float32)
        p[f"{prefix}_v"] = 0.5 + jax.random.uniform(next(keys), (c,), dtype=jnp.float32)

    params = {}
    params["w1"] = conv_w((DSC1, 3, 3, 3));              add_bn("bn1", DSC1, params)
    params["dsc1_dw_w"] = conv_w((DSC1, 1, 3, 3));       add_bn("dsc1_bn1", DSC1, params)
    params["dsc1_pw_w"] = conv_w((DSC2, DSC1, 1, 1));    add_bn("dsc1_bn2", DSC2, params)
    params["dsc2_dw_w"] = conv_w((DSC2, 1, 3, 3));       add_bn("dsc2_bn1", DSC2, params)
    params["dsc2_pw_w"] = conv_w((DSC2OUT, DSC2, 1, 1)); add_bn("dsc2_bn2", DSC2OUT, params)

    x = jax.random.normal(next(keys), (N, 3, H, W), dtype=jnp.float32)

    fwd = jax.jit(learning_to_downsample)
    out = jax.block_until_ready(fwd(x, params))

    ref = _reference(x, params)
    assert out.shape == ref.shape == (N, DSC2OUT, 4, 4), (out.shape, ref.shape)
    max_err = float(jnp.max(jnp.abs(out - ref)))
    assert jnp.allclose(out, ref, atol=2e-2, rtol=2e-2), f"mismatch vs reference: {max_err}"

    print("KERNEL_OK")
</pallas_src>

<mosaic_0001>
module attributes {stable_mosaic.version = 11 : i64} {
  func.func @_stem_kernel(%arg0: i32, %arg1: memref<256x27xbf16, #tpu.memory_space<vmem>>, %arg2: memref<27x8xbf16, #tpu.memory_space<vmem>>, %arg3: memref<1x8xf32, #tpu.memory_space<vmem>>, %arg4: memref<256x8xbf16, #tpu.memory_space<vmem>>) attributes {dimension_semantics = [#tpu.dimension_semantics<parallel>], iteration_bounds = array<i64: 2>, scalar_prefetch = 0 : i64, scratch_operands = 0 : i64, tpu.core_type = #tpu.core_type<tc>, window_params = [{transform_indices = @transform_0, window_bounds = array<i64: 256, 27>}, {pipeline_mode = #tpu.pipeline_mode<synchronous>, transform_indices = @transform_1, window_bounds = array<i64: 27, 8>}, {pipeline_mode = #tpu.pipeline_mode<synchronous>, transform_indices = @transform_2, window_bounds = array<i64: 1, 8>}, {transform_indices = @transform_3, window_bounds = array<i64: 256, 8>}]} {
    %c0 = arith.constant 0 : index
    %c0_0 = arith.constant 0 : index
    %0 = vector.load %arg1[%c0, %c0_0] : memref<256x27xbf16, #tpu.memory_space<vmem>>, vector<256x27xbf16>
    %c0_1 = arith.constant 0 : index
    %c0_2 = arith.constant 0 : index
    %1 = vector.load %arg2[%c0_1, %c0_2] : memref<27x8xbf16, #tpu.memory_space<vmem>>, vector<27x8xbf16>
    %cst = arith.constant dense<0.000000e+00> : vector<256x8xf32>
    %2 = tpu.matmul %0, %1, %cst {dimension_numbers = #tpu.dot_dimension_numbers<[1], [0], [0], [1], [0, 0, 1, 1], [], []>} : vector<256x27xbf16>, vector<27x8xbf16>, vector<256x8xf32> -> vector<256x8xf32>
    %c0_3 = arith.constant 0 : index
    %c0_4 = arith.constant 0 : index
    %3 = vector.load %arg3[%c0_3, %c0_4] : memref<1x8xf32, #tpu.memory_space<vmem>>, vector<1x8xf32>
    %4 = vector.broadcast %3 : vector<1x8xf32> to vector<256x8xf32>
    %5 = arith.addf %2, %4 : vector<256x8xf32>
    %cst_5 = arith.constant 0.000000e+00 : f32
    %6 = vector.broadcast %cst_5 : f32 to vector<256x8xf32>
    %7 = arith.maximumf %5, %6 : vector<256x8xf32>
    %8 = arith.truncf %7 : vector<256x8xf32> to vector<256x8xbf16>
    %c0_6 = arith.constant 0 : index
    %c0_7 = arith.constant 0 : index
    %9 = vector.load %arg4[%c0_6, %c0_7] : memref<256x8xbf16, #tpu.memory_space<vmem>>, vector<256x8xbf16>
    tpu.vector_store %arg4[%c0_6, %c0_7], %8 {strides = array<i32>} : memref<256x8xbf16, #tpu.memory_space<vmem>>, vector<256x8xbf16>,
    return
  }
  func.func @transform_0(%arg0: i32) -> (i32, i32) {
    %c0_i32 = arith.constant 0 : i32
    %c0_i32_0 = arith.constant 0 : i32
    return %arg0, %c0_i32 : i32, i32
  }
  func.func @transform_1(%arg0: i32) -> (i32, i32) {
    %c0_i32 = arith.constant 0 : i32
    %c0_i32_0 = arith.constant 0 : i32
    %c0_i32_1 = arith.constant 0 : i32
    return %c0_i32, %c0_i32_0 : i32, i32
  }
  func.func @transform_2(%arg0: i32) -> (i32, i32) {
    %c0_i32 = arith.constant 0 : i32
    %c0_i32_0 = arith.constant 0 : i32
    %c0_i32_1 = arith.constant 0 : i32
    return %c0_i32, %c0_i32_0 : i32, i32
  }
  func.func @transform_3(%arg0: i32) -> (i32, i32) {
    %c0_i32 = arith.constant 0 : i32
    %c0_i32_0 = arith.constant 0 : i32
    return %arg0, %c0_i32 : i32, i32
  }
}

module attributes {stable_mosaic.version = 11 : i64} {
  func.func @_dsconv_kernel(%arg0: i32, %arg1: i32, %arg2: memref<8x2x12x16xbf16, #tpu.memory_space<vmem>>, %arg3: memref<1x1x12x16xbf16, #tpu.memory_space<vmem>>, %arg4: memref<9x8xf32, #tpu.memory_space<vmem>>, %arg5: memref<1x8xf32, #tpu.memory_space<vmem>>, %arg6: memref<8x16xbf16, #tpu.memory_space<vmem>>, %arg7: memref<1x16xf32, #tpu.memory_space<vmem>>, %arg8: memref<8x8x16xbf16, #tpu.memory_space<vmem>>) attributes {dimension_semantics = [#tpu.dimension_semantics<parallel>, #tpu.dimension_semantics<parallel>], iteration_bounds = array<i64: 2, 1>, scalar_prefetch = 0 : i64, scratch_operands = 0 : i64, tpu.core_type = #tpu.core_type<tc>, window_params = [{transform_indices = @transform_0, window_bounds = array<i64: 8, 2, 12, 16>}, {transform_indices = @transform_1, window_bounds = array<i64: 1, 1, 12, 16>}, {pipeline_mode = #tpu.pipeline_mode<synchronous>, transform_indices = @transform_2, window_bounds = array<i64: 9, 8>}, {pipeline_mode = #tpu.pipeline_mode<synchronous>, transform_indices = @transform_3, window_bounds = array<i64: 1, 8>}, {pipeline_mode = #tpu.pipeline_mode<synchronous>, transform_indices = @transform_4, window_bounds = array<i64: 8, 16>}, {pipeline_mode = #tpu.pipeline_mode<synchronous>, transform_indices = @transform_5, window_bounds = array<i64: 1, 16>}, {transform_indices = @transform_6, window_bounds = array<i64: 8, 8, 16>}]} {
    %c0 = arith.constant 0 : index
    %c0_0 = arith.constant 0 : index
    %c0_1 = arith.constant 0 : index
    %c0_2 = arith.constant 0 : index
    %0 = vector.load %arg2[%c0, %c0_0, %c0_1, %c0_2] : memref<8x2x12x16xbf16, #tpu.memory_space<vmem>>, vector<8x2x12x16xbf16>
    %1 = vector.extract_strided_slice %0 {offsets = [0, 0, 0, 0], sizes = [8, 1, 12, 16], strides = [1, 1, 1, 1]} : vector<8x2x12x16xbf16> to vector<8x1x12x16xbf16>
    %2 = vector.shape_cast %1 : vector<8x1x12x16xbf16> to vector<8x12x16xbf16>
    %3 = vector.extract_strided_slice %0 {offsets = [0, 1, 0, 0], sizes = [8, 1, 12, 16], strides = [1, 1, 1, 1]} : vector<8x2x12x16xbf16> to vector<8x1x12x16xbf16>
    %4 = vector.shape_cast %3 : vector<8x1x12x16xbf16> to vector<8x12x16xbf16>
    %c0_3 = arith.constant 0 : index
    %c0_4 = arith.constant 0 : index
    %c0_5 = arith.constant 0 : index
    %c0_6 = arith.constant 0 : index
    %5 = vector.load %arg3[%c0_3, %c0_4, %c0_5, %c0_6] : memref<1x1x12x16xbf16, #tpu.memory_space<vmem>>, vector<1x1x12x16xbf16>
    %6 = vector.shape_cast %5 : vector<1x1x12x16xbf16> to vector<1x12x16xbf16>
    %7 = vector.extract_strided_slice %2 {offsets = [1, 0, 0], sizes = [7, 12, 16], strides = [1, 1, 1]} : vector<8x12x16xbf16> to vector<7x12x16xbf16>
    %8 = tpu.concatenate %7, %6 in 0 : vector<7x12x16xbf16>, vector<1x12x16xbf16> -> vector<8x12x16xbf16>
    %c0_7 = arith.constant 0 : index
    %c0_8 = arith.constant 0 : index
    %9 = vector.load %arg4[%c0_7, %c0_8] : memref<9x8xf32, #tpu.memory_space<vmem>>, vector<9x8xf32>
    %cst = arith.constant 0.000000e+00 : f32
    %10 = vector.broadcast %cst : f32 to vector<8x8x8xf32>
    %11 = vector.extract_strided_slice %2 {offsets = [0, 0, 0], sizes = [8, 8, 8], strides = [1, 1, 1]} : vector<8x12x16xbf16> to vector<8x8x8xbf16>
    %12 = arith.extf %11 : vector<8x8x8xbf16> to vector<8x8x8xf32>
    %13 = vector.extract_strided_slice %9 {offsets = [0, 0], sizes = [1, 8], strides = [1, 1]} : vector<9x8xf32> to vector<1x8xf32>
    %14 = vector.shape_cast %13 : vector<1x8xf32> to vector<8xf32>
    %15 = vector.shape_cast %14 : vector<8xf32> to vector<1x1x8xf32>
    %16 = vector.broadcast %15 : vector<1x1x8xf32> to vector<8x8x8xf32>
    %17 = arith.mulf %12, %16 : vector<8x8x8xf32>
    %18 = arith.addf %10, %17 : vector<8x8x8xf32>
    %19 = vector.extract_strided_slice %2 {offsets = [0, 0, 8], sizes = [8, 8, 8], strides = [1, 1, 1]} : vector<8x12x16xbf16> to vector<8x8x8xbf16>
    %20 = arith.extf %19 : vector<8x8x8xbf16> to vector<8x8x8xf32>
    %21 = vector.extract_strided_slice %9 {offsets = [1, 0], sizes = [1, 8], strides = [1, 1]} : vector<9x8xf32> to vector<1x8xf32>
    %22 = vector.shape_cast %21 : vector<1x8xf32> to vector<8xf32>
    %23 = vector.shape_cast %22 : vector<8xf32> to vector<1x1x8xf32>
    %24 = vector.broadcast %23 : vector<1x1x8xf32> to vector<8x8x8xf32>
    %25 = arith.mulf %20, %24 : vector<8x8x8xf32>
    %26 = arith.addf %18, %25 : vector<8x8x8xf32>
    %27 = vector.extract_strided_slice %2 {offsets = [0, 1, 0], sizes = [8, 8, 8], strides = [1, 1, 1]} : vector<8x12x16xbf16> to vector<8x8x8xbf16>
    %28 = arith.extf %27 : vector<8x8x8xbf16> to vector<8x8x8xf32>
    %29 = vector.extract_strided_slice %9 {offsets = [2, 0], sizes = [1, 8], strides = [1, 1]} : vector<9x8xf32> to vector<1x8xf32>
    %30 = vector.shape_cast %29 : vector<1x8xf32> to vector<8xf32>
    %31 = vector.shape_cast %30 : vector<8xf32> to vector<1x1x8xf32>
    %32 = vector.broadcast %31 : vector<1x1x8xf32> to vector<8x8x8xf32>
    %33 = arith.mulf %28, %32 : vector<8x8x8xf32>
    %34 = arith.addf %26, %33 : vector<8x8x8xf32>
    %35 = vector.extract_strided_slice %4 {offsets = [0, 0, 0], sizes = [8, 8, 8], strides = [1, 1, 1]} : vector<8x12x16xbf16> to vector<8x8x8xbf16>
    %36 = arith.extf %35 : vector<8x8x8xbf16> to vector<8x8x8xf32>
    %37 = vector.extract_strided_slice %9 {offsets = [3, 0], sizes = [1, 8], strides = [1, 1]} : vector<9x8xf32> to vector<1x8xf32>
    %38 = vector.shape_cast %37 : vector<1x8xf32> to vector<8xf32>
    %39 = vector.shape_cast %38 : vector<8xf32> to vector<1x1x8xf32>
    %40 = vector.broadcast %39 : vector<1x1x8xf32> to vector<8x8x8xf32>
    %41 = arith.mulf %36, %40 : vector<8x8x8xf32>
    %42 = arith.addf %34, %41 : vector<8x8x8xf32>
    %43 = vector.extract_strided_slice %4 {offsets = [0, 0, 8], sizes = [8, 8, 8], strides = [1, 1, 1]} : vector<8x12x16xbf16> to vector<8x8x8xbf16>
    %44 = arith.extf %43 : vector<8x8x8xbf16> to vector<8x8x8xf32>
    %45 = vector.extract_strided_slice %9 {offsets = [4, 0], sizes = [1, 8], strides = [1, 1]} : vector<9x8xf32> to vector<1x8xf32>
    %46 = vector.shape_cast %45 : vector<1x8xf32> to vector<8xf32>
    %47 = vector.shape_cast %46 : vector<8xf32> to vector<1x1x8xf32>
    %48 = vector.broadcast %47 : vector<1x1x8xf32> to vector<8x8x8xf32>
    %49 = arith.mulf %44, %48 : vector<8x8x8xf32>
    %50 = arith.addf %42, %49 : vector<8x8x8xf32>
    %51 = vector.extract_strided_slice %4 {offsets = [0, 1, 0], sizes = [8, 8, 8], strides = [1, 1, 1]} : vector<8x12x16xbf16> to vector<8x8x8xbf16>
    %52 = arith.extf %51 : vector<8x8x8xbf16> to vector<8x8x8xf32>
    %53 = vector.extract_strided_slice %9 {offsets = [5, 0], sizes = [1, 8], strides = [1, 1]} : vector<9x8xf32> to vector<1x8xf32>
    %54 = vector.shape_cast %53 : vector<1x8xf32> to vector<8xf32>
    %55 = vector.shape_cast %54 : vector<8xf32> to vector<1x1x8xf32>
    %56 = vector.broadcast %55 : vector<1x1x8xf32> to vector<8x8x8xf32>
    %57 = arith.mulf %52, %56 : vector<8x8x8xf32>
    %58 = arith.addf %50, %57 : vector<8x8x8xf32>
    %59 = vector.extract_strided_slice %8 {offsets = [0, 0, 0], sizes = [8, 8, 8], strides = [1, 1, 1]} : vector<8x12x16xbf16> to vector<8x8x8xbf16>
    %60 = arith.extf %59 : vector<8x8x8xbf16> to vector<8x8x8xf32>
    %61 = vector.extract_strided_slice %9 {offsets = [6, 0], sizes = [1, 8], strides = [1, 1]} : vector<9x8xf32> to vector<1x8xf32>
    %62 = vector.shape_cast %61 : vector<1x8xf32> to vector<8xf32>
    %63 = vector.shape_cast %62 : vector<8xf32> to vector<1x1x8xf32>
    %64 = vector.broadcast %63 : vector<1x1x8xf32> to vector<8x8x8xf32>
    %65 = arith.mulf %60, %64 : vector<8x8x8xf32>
    %66 = arith.addf %58, %65 : vector<8x8x8xf32>
    %67 = vector.extract_strided_slice %8 {offsets = [0, 0, 8], sizes = [8, 8, 8], strides = [1, 1, 1]} : vector<8x12x16xbf16> to vector<8x8x8xbf16>
    %68 = arith.extf %67 : vector<8x8x8xbf16> to vector<8x8x8xf32>
    %69 = vector.extract_strided_slice %9 {offsets = [7, 0], sizes = [1, 8], strides = [1, 1]} : vector<9x8xf32> to vector<1x8xf32>
    %70 = vector.shape_cast %69 : vector<1x8xf32> to vector<8xf32>
    %71 = vector.shape_cast %70 : vector<8xf32> to vector<1x1x8xf32>
    %72 = vector.broadcast %71 : vector<1x1x8xf32> to vector<8x8x8xf32>
    %73 = arith.mulf %68, %72 : vector<8x8x8xf32>
    %74 = arith.addf %66, %73 : vector<8x8x8xf32>
    %75 = vector.extract_strided_slice %8 {offsets = [0, 1, 0], sizes = [8, 8, 8], strides = [1, 1, 1]} : vector<8x12x16xbf16> to vector<8x8x8xbf16>
    %76 = arith.extf %75 : vector<8x8x8xbf16> to vector<8x8x8xf32>
    %77 = vector.extract_strided_slice %9 {offsets = [8, 0], sizes = [1, 8], strides = [1, 1]} : vector<9x8xf32> to vector<1x8xf32>
    %78 = vector.shape_cast %77 : vector<1x8xf32> to vector<8xf32>
    %79 = vector.shape_cast %78 : vector<8xf32> to vector<1x1x8xf32>
    %80 = vector.broadcast %79 : vector<1x1x8xf32> to vector<8x8x8xf32>
    %81 = arith.mulf %76, %80 : vector<8x8x8xf32>
    %82 = arith.addf %74, %81 : vector<8x8x8xf32>
    %c0_9 = arith.constant 0 : index
    %c0_10 = arith.constant 0 : index
    %83 = vector.load %arg5[%c0_9, %c0_10] : memref<1x8xf32, #tpu.memory_space<vmem>>, vector<1x8xf32>
    %84 = vector.shape_cast %83 : vector<1x8xf32> to vector<1x1x8xf32>
    %85 = vector.broadcast %84 : vector<1x1x8xf32> to vector<8x8x8xf32>
    %86 = arith.addf %82, %85 : vector<8x8x8xf32>
    %cst_11 = arith.constant 0.000000e+00 : f32
    %87 = vector.broadcast %cst_11 : f32 to vector<8x8x8xf32>
    %88 = arith.maximumf %86, %87 : vector<8x8x8xf32>
    %89 = arith.truncf %88 : vector<8x8x8xf32> to vector<8x8x8xbf16>
    %90 = vector.shape_cast %89 : vector<8x8x8xbf16> to vector<64x8xbf16>
    %c0_12 = arith.constant 0 : index
    %c0_13 = arith.constant 0 : index
    %91 = vector.load %arg6[%c0_12, %c0_13] : memref<8x16xbf16, #tpu.memory_space<vmem>>, vector<8x16xbf16>
    %cst_14 = arith.constant dense<0.000000e+00> : vector<64x16xf32>
    %92 = tpu.matmul %90, %91, %cst_14 {dimension_numbers = #tpu.dot_dimension_numbers<[1], [0], [0], [1], [0, 0, 1, 1], [], []>} : vector<64x8xbf16>, vector<8x16xbf16>, vector<64x16xf32> -> vector<64x16xf32>
    %c0_15 = arith.constant 0 : index
    %c0_16 = arith.constant 0 : index
    %93 = vector.load %arg7[%c0_15, %c0_16] : memref<1x16xf32, #tpu.memory_space<vmem>>, vector<1x16xf32>
    %94 = vector.broadcast %93 : vector<1x16xf32> to vector<64x16xf32>
    %95 = arith.addf %92, %94 : vector<64x16xf32>
    %cst_17 = arith.constant 0.000000e+00 : f32
    %96 = vector.broadcast %cst_17 : f32 to vector<64x16xf32>
    %97 = arith.maximumf %95, %96 : vector<64x16xf32>
    %98 = vector.shape_cast %97 : vector<64x16xf32> to vector<8x8x16xf32>
    %99 = arith.truncf %98 : vector<8x8x16xf32> to vector<8x8x16xbf16>
    %c0_18 = arith.constant 0 : index
    %c0_19 = arith.constant 0 : index
    %c0_20 = arith.constant 0 : index
    %100 = vector.load %arg8[%c0_18, %c0_19, %c0_20] : memref<8x8x16xbf16, #tpu.memory_space<vmem>>, vector<8x8x16xbf16>
    tpu.vector_store %arg8[%c0_18, %c0_19, %c0_20], %99 {strides = array<i32>} : memref<8x8x16xbf16, #tpu.memory_space<vmem>>, vector<8x8x16xbf16>,
    return
  }
  func.func @transform_0(%arg0: i32, %arg1: i32) -> (i32, i32, i32, i32) {
    %c2_i32 = arith.constant 2 : i32
    %0 = arith.muli %arg0, %c2_i32 : i32
    %1 = arith.addi %0, %arg1 : i32
    %c0_i32 = arith.constant 0 : i32
    %c0_i32_0 = arith.constant 0 : i32
    %c0_i32_1 = arith.constant 0 : i32
    %c0_i32_2 = arith.constant 0 : i32
    return %1, %c0_i32, %c0_i32_0, %c0_i32_1 : i32, i32, i32, i32
  }
  func.func @transform_1(%arg0: i32, %arg1: i32) -> (i32, i32, i32, i32) {
    %c16_i32 = arith.constant 16 : i32
    %0 = arith.muli %arg0, %c16_i32 : i32
    %c1_i32 = arith.constant 1 : i32
    %1 = arith.addi %arg1, %c1_i32 : i32
    %c8_i32 = arith.constant 8 : i32
    %2 = arith.muli %c8_i32, %1 : i32
    %3 = arith.addi %0, %2 : i32
    %c0_i32 = arith.constant 0 : i32
    %c0_i32_0 = arith.constant 0 : i32
    %c0_i32_1 = arith.constant 0 : i32
    %c0_i32_2 = arith.constant 0 : i32
    return %3, %c0_i32, %c0_i32_0, %c0_i32_1 : i32, i32, i32, i32
  }
  func.func @transform_2(%arg0: i32, %arg1: i32) -> (i32, i32) {
    %c0_i32 = arith.constant 0 : i32
    %c0_i32_0 = arith.constant 0 : i32
    %c0_i32_1 = arith.constant 0 : i32
    return %c0_i32, %c0_i32_0 : i32, i32
  }
  func.func @transform_3(%arg0: i32, %arg1: i32) -> (i32, i32) {
    %c0_i32 = arith.constant 0 : i32
    %c0_i32_0 = arith.constant 0 : i32
    %c0_i32_1 = arith.constant 0 : i32
    return %c0_i32, %c0_i32_0 : i32, i32
  }
  func.func @transform_4(%arg0: i32, %arg1: i32) -> (i32, i32) {
    %c0_i32 = arith.constant 0 : i32
    %c0_i32_0 = arith.constant 0 : i32
    %c0_i32_1 = arith.constant 0 : i32
    return %c0_i32, %c0_i32_0 : i32, i32
  }
  func.func @transform_5(%arg0: i32, %arg1: i32) -> (i32, i32) {
    %c0_i32 = arith.constant 0 : i32
    %c0_i32_0 = arith.constant 0 : i32
    %c0_i32_1 = arith.constant 0 : i32
    return %c0_i32, %c0_i32_0 : i32, i32
  }
  func.func @transform_6(%arg0: i32, %arg1: i32) -> (i32, i32, i32) {
    %c1_i32 = arith.constant 1 : i32
    %0 = arith.muli %arg0, %c1_i32 : i32
    %1 = arith.addi %0, %arg1 : i32
    %c0_i32 = arith.constant 0 : i32
    %c0_i32_0 = arith.constant 0 : i32
    %c0_i32_1 = arith.constant 0 : i32
    return %1, %c0_i32, %c0_i32_0 : i32, i32, i32
  }
}

module attributes {stable_mosaic.version = 11 : i64} {
  func.func @_dsconv_kernel(%arg0: i32, %arg1: i32, %arg2: memref<4x2x8x32xbf16, #tpu.memory_space<vmem>>, %arg3: memref<1x1x8x32xbf16, #tpu.memory_space<vmem>>, %arg4: memref<9x16xf32, #tpu.memory_space<vmem>>, %arg5: memref<1x16xf32, #tpu.memory_space<vmem>>, %arg6: memref<16x32xbf16, #tpu.memory_space<vmem>>, %arg7: memref<1x32xf32, #tpu.memory_space<vmem>>, %arg8: memref<4x4x32xbf16, #tpu.memory_space<vmem>>) attributes {dimension_semantics = [#tpu.dimension_semantics<parallel>, #tpu.dimension_semantics<parallel>], iteration_bounds = array<i64: 2, 1>, scalar_prefetch = 0 : i64, scratch_operands = 0 : i64, tpu.core_type = #tpu.core_type<tc>, window_params = [{transform_indices = @transform_0, window_bounds = array<i64: 4, 2, 8, 32>}, {transform_indices = @transform_1, window_bounds = array<i64: 1, 1, 8, 32>}, {pipeline_mode = #tpu.pipeline_mode<synchronous>, transform_indices = @transform_2, window_bounds = array<i64: 9, 16>}, {pipeline_mode = #tpu.pipeline_mode<synchronous>, transform_indices = @transform_3, window_bounds = array<i64: 1, 16>}, {pipeline_mode = #tpu.pipeline_mode<synchronous>, transform_indices = @transform_4, window_bounds = array<i64: 16, 32>}, {pipeline_mode = #tpu.pipeline_mode<synchronous>, transform_indices = @transform_5, window_bounds = array<i64: 1, 32>}, {transform_indices = @transform_6, window_bounds = array<i64: 4, 4, 32>}]} {
    %c0 = arith.constant 0 : index
    %c0_0 = arith.constant 0 : index
    %c0_1 = arith.constant 0 : index
    %c0_2 = arith.constant 0 : index
    %0 = vector.load %arg2[%c0, %c0_0, %c0_1, %c0_2] : memref<4x2x8x32xbf16, #tpu.memory_space<vmem>>, vector<4x2x8x32xbf16>
    %1 = vector.extract_strided_slice %0 {offsets = [0, 0, 0, 0], sizes = [4, 1, 8, 32], strides = [1, 1, 1, 1]} : vector<4x2x8x32xbf16> to vector<4x1x8x32xbf16>
    %2 = vector.shape_cast %1 : vector<4x1x8x32xbf16> to vector<4x8x32xbf16>
    %3 = vector.extract_strided_slice %0 {offsets = [0, 1, 0, 0], sizes = [4, 1, 8, 32], strides = [1, 1, 1, 1]} : vector<4x2x8x32xbf16> to vector<4x1x8x32xbf16>
    %4 = vector.shape_cast %3 : vector<4x1x8x32xbf16> to vector<4x8x32xbf16>
    %c0_3 = arith.constant 0 : index
    %c0_4 = arith.constant 0 : index
    %c0_5 = arith.constant 0 : index
    %c0_6 = arith.constant 0 : index
    %5 = vector.load %arg3[%c0_3, %c0_4, %c0_5, %c0_6] : memref<1x1x8x32xbf16, #tpu.memory_space<vmem>>, vector<1x1x8x32xbf16>
    %6 = vector.shape_cast %5 : vector<1x1x8x32xbf16> to vector<1x8x32xbf16>
    %7 = vector.extract_strided_slice %2 {offsets = [1, 0, 0], sizes = [3, 8, 32], strides = [1, 1, 1]} : vector<4x8x32xbf16> to vector<3x8x32xbf16>
    %8 = tpu.concatenate %7, %6 in 0 : vector<3x8x32xbf16>, vector<1x8x32xbf16> -> vector<4x8x32xbf16>
    %c0_7 = arith.constant 0 : index
    %c0_8 = arith.constant 0 : index
    %9 = vector.load %arg4[%c0_7, %c0_8] : memref<9x16xf32, #tpu.memory_space<vmem>>, vector<9x16xf32>
    %cst = arith.constant 0.000000e+00 : f32
    %10 = vector.broadcast %cst : f32 to vector<4x4x16xf32>
    %11 = vector.extract_strided_slice %2 {offsets = [0, 0, 0], sizes = [4, 4, 16], strides = [1, 1, 1]} : vector<4x8x32xbf16> to vector<4x4x16xbf16>
    %12 = arith.extf %11 : vector<4x4x16xbf16> to vector<4x4x16xf32>
    %13 = vector.extract_strided_slice %9 {offsets = [0, 0], sizes = [1, 16], strides = [1, 1]} : vector<9x16xf32> to vector<1x16xf32>
    %14 = vector.shape_cast %13 : vector<1x16xf32> to vector<16xf32>
    %15 = vector.shape_cast %14 : vector<16xf32> to vector<1x1x16xf32>
    %16 = vector.broadcast %15 : vector<1x1x16xf32> to vector<4x4x16xf32>
    %17 = arith.mulf %12, %16 : vector<4x4x16xf32>
    %18 = arith.addf %10, %17 : vector<4x4x16xf32>
    %19 = vector.extract_strided_slice %2 {offsets = [0, 0, 16], sizes = [4, 4, 16], strides = [1, 1, 1]} : vector<4x8x32xbf16> to vector<4x4x16xbf16>
    %20 = arith.extf %19 : vector<4x4x16xbf16> to vector<4x4x16xf32>
    %21 = vector.extract_strided_slice %9 {offsets = [1, 0], sizes = [1, 16], strides = [1, 1]} : vector<9x16xf32> to vector<1x16xf32>
    %22 = vector.shape_cast %21 : vector<1x16xf32> to vector<16xf32>
    %23 = vector.shape_cast %22 : vector<16xf32> to vector<1x1x16xf32>
    %24 = vector.broadcast %23 : vector<1x1x16xf32> to vector<4x4x16xf32>
    %25 = arith.mulf %20, %24 : vector<4x4x16xf32>
    %26 = arith.addf %18, %25 : vector<4x4x16xf32>
    %27 = vector.extract_strided_slice %2 {offsets = [0, 1, 0], sizes = [4, 4, 16], strides = [1, 1, 1]} : vector<4x8x32xbf16> to vector<4x4x16xbf16>
    %28 = arith.extf %27 : vector<4x4x16xbf16> to vector<4x4x16xf32>
    %29 = vector.extract_strided_slice %9 {offsets = [2, 0], sizes = [1, 16], strides = [1, 1]} : vector<9x16xf32> to vector<1x16xf32>
    %30 = vector.shape_cast %29 : vector<1x16xf32> to vector<16xf32>
    %31 = vector.shape_cast %30 : vector<16xf32> to vector<1x1x16xf32>
    %32 = vector.broadcast %31 : vector<1x1x16xf32> to vector<4x4x16xf32>
    %33 = arith.mulf %28, %32 : vector<4x4x16xf32>
    %34 = arith.addf %26, %33 : vector<4x4x16xf32>
    %35 = vector.extract_strided_slice %4 {offsets = [0, 0, 0], sizes = [4, 4, 16], strides = [1, 1, 1]} : vector<4x8x32xbf16> to vector<4x4x16xbf16>
    %36 = arith.extf %35 : vector<4x4x16xbf16> to vector<4x4x16xf32>
    %37 = vector.extract_strided_slice %9 {offsets = [3, 0], sizes = [1, 16], strides = [1, 1]} : vector<9x16xf32> to vector<1x16xf32>
    %38 = vector.shape_cast %37 : vector<1x16xf32> to vector<16xf32>
    %39 = vector.shape_cast %38 : vector<16xf32> to vector<1x1x16xf32>
    %40 = vector.broadcast %39 : vector<1x1x16xf32> to vector<4x4x16xf32>
    %41 = arith.mulf %36, %40 : vector<4x4x16xf32>
    %42 = arith.addf %34, %41 : vector<4x4x16xf32>
    %43 = vector.extract_strided_slice %4 {offsets = [0, 0, 16], sizes = [4, 4, 16], strides = [1, 1, 1]} : vector<4x8x32xbf16> to vector<4x4x16xbf16>
    %44 = arith.extf %43 : vector<4x4x16xbf16> to vector<4x4x16xf32>
    %45 = vector.extract_strided_slice %9 {offsets = [4, 0], sizes = [1, 16], strides = [1, 1]} : vector<9x16xf32> to vector<1x16xf32>
    %46 = vector.shape_cast %45 : vector<1x16xf32> to vector<16xf32>
    %47 = vector.shape_cast %46 : vector<16xf32> to vector<1x1x16xf32>
    %48 = vector.broadcast %47 : vector<1x1x16xf32> to vector<4x4x16xf32>
    %49 = arith.mulf %44, %48 : vector<4x4x16xf32>
    %50 = arith.addf %42, %49 : vector<4x4x16xf32>
    %51 = vector.extract_strided_slice %4 {offsets = [0, 1, 0], sizes = [4, 4, 16], strides = [1, 1, 1]} : vector<4x8x32xbf16> to vector<4x4x16xbf16>
    %52 = arith.extf %51 : vector<4x4x16xbf16> to vector<4x4x16xf32>
    %53 = vector.extract_strided_slice %9 {offsets = [5, 0], sizes = [1, 16], strides = [1, 1]} : vector<9x16xf32> to vector<1x16xf32>
    %54 = vector.shape_cast %53 : vector<1x16xf32> to vector<16xf32>
    %55 = vector.shape_cast %54 : vector<16xf32> to vector<1x1x16xf32>
    %56 = vector.broadcast %55 : vector<1x1x16xf32> to vector<4x4x16xf32>
    %57 = arith.mulf %52, %56 : vector<4x4x16xf32>
    %58 = arith.addf %50, %57 : vector<4x4x16xf32>
    %59 = vector.extract_strided_slice %8 {offsets = [0, 0, 0], sizes = [4, 4, 16], strides = [1, 1, 1]} : vector<4x8x32xbf16> to vector<4x4x16xbf16>
    %60 = arith.extf %59 : vector<4x4x16xbf16> to vector<4x4x16xf32>
    %61 = vector.extract_strided_slice %9 {offsets = [6, 0], sizes = [1, 16], strides = [1, 1]} : vector<9x16xf32> to vector<1x16xf32>
    %62 = vector.shape_cast %61 : vector<1x16xf32> to vector<16xf32>
    %63 = vector.shape_cast %62 : vector<16xf32> to vector<1x1x16xf32>
    %64 = vector.broadcast %63 : vector<1x1x16xf32> to vector<4x4x16xf32>
    %65 = arith.mulf %60, %64 : vector<4x4x16xf32>
    %66 = arith.addf %58, %65 : vector<4x4x16xf32>
    %67 = vector.extract_strided_slice %8 {offsets = [0, 0, 16], sizes = [4, 4, 16], strides = [1, 1, 1]} : vector<4x8x32xbf16> to vector<4x4x16xbf16>
    %68 = arith.extf %67 : vector<4x4x16xbf16> to vector<4x4x16xf32>
    %69 = vector.extract_strided_slice %9 {offsets = [7, 0], sizes = [1, 16], strides = [1, 1]} : vector<9x16xf32> to vector<1x16xf32>
    %70 = vector.shape_cast %69 : vector<1x16xf32> to vector<16xf32>
    %71 = vector.shape_cast %70 : vector<16xf32> to vector<1x1x16xf32>
    %72 = vector.broadcast %71 : vector<1x1x16xf32> to vector<4x4x16xf32>
    %73 = arith.mulf %68, %72 : vector<4x4x16xf32>
    %74 = arith.addf %66, %73 : vector<4x4x16xf32>
    %75 = vector.extract_strided_slice %8 {offsets = [0, 1, 0], sizes = [4, 4, 16], strides = [1, 1, 1]} : vector<4x8x32xbf16> to vector<4x4x16xbf16>
    %76 = arith.extf %75 : vector<4x4x16xbf16> to vector<4x4x16xf32>
    %77 = vector.extract_strided_slice %9 {offsets = [8, 0], sizes = [1, 16], strides = [1, 1]} : vector<9x16xf32> to vector<1x16xf32>
    %78 = vector.shape_cast %77 : vector<1x16xf32> to vector<16xf32>
    %79 = vector.shape_cast %78 : vector<16xf32> to vector<1x1x16xf32>
    %80 = vector.broadcast %79 : vector<1x1x16xf32> to vector<4x4x16xf32>
    %81 = arith.mulf %76, %80 : vector<4x4x16xf32>
    %82 = arith.addf %74, %81 : vector<4x4x16xf32>
    %c0_9 = arith.constant 0 : index
    %c0_10 = arith.constant 0 : index
    %83 = vector.load %arg5[%c0_9, %c0_10] : memref<1x16xf32, #tpu.memory_space<vmem>>, vector<1x16xf32>
    %84 = vector.shape_cast %83 : vector<1x16xf32> to vector<1x1x16xf32>
    %85 = vector.broadcast %84 : vector<1x1x16xf32> to vector<4x4x16xf32>
    %86 = arith.addf %82, %85 : vector<4x4x16xf32>
    %cst_11 = arith.constant 0.000000e+00 : f32
    %87 = vector.broadcast %cst_11 : f32 to vector<4x4x16xf32>
    %88 = arith.maximumf %86, %87 : vector<4x4x16xf32>
    %89 = arith.truncf %88 : vector<4x4x16xf32> to vector<4x4x16xbf16>
    %90 = vector.shape_cast %89 : vector<4x4x16xbf16> to vector<16x16xbf16>
    %c0_12 = arith.constant 0 : index
    %c0_13 = arith.constant 0 : index
    %91 = vector.load %arg6[%c0_12, %c0_13] : memref<16x32xbf16, #tpu.memory_space<vmem>>, vector<16x32xbf16>
    %cst_14 = arith.constant dense<0.000000e+00> : vector<16x32xf32>
    %92 = tpu.matmul %90, %91, %cst_14 {dimension_numbers = #tpu.dot_dimension_numbers<[1], [0], [0], [1], [0, 0, 1, 1], [], []>} : vector<16x16xbf16>, vector<16x32xbf16>, vector<16x32xf32> -> vector<16x32xf32>
    %c0_15 = arith.constant 0 : index
    %c0_16 = arith.constant 0 : index
    %93 = vector.load %arg7[%c0_15, %c0_16] : memref<1x32xf32, #tpu.memory_space<vmem>>, vector<1x32xf32>
    %94 = vector.broadcast %93 : vector<1x32xf32> to vector<16x32xf32>
    %95 = arith.addf %92, %94 : vector<16x32xf32>
    %cst_17 = arith.constant 0.000000e+00 : f32
    %96 = vector.broadcast %cst_17 : f32 to vector<16x32xf32>
    %97 = arith.maximumf %95, %96 : vector<16x32xf32>
    %98 = vector.shape_cast %97 : vector<16x32xf32> to vector<4x4x32xf32>
    %99 = arith.truncf %98 : vector<4x4x32xf32> to vector<4x4x32xbf16>
    %c0_18 = arith.constant 0 : index
    %c0_19 = arith.constant 0 : index
    %c0_20 = arith.constant 0 : index
    %100 = vector.load %arg8[%c0_18, %c0_19, %c0_20] : memref<4x4x32xbf16, #tpu.memory_space<vmem>>, vector<4x4x32xbf16>
    tpu.vector_store %arg8[%c0_18, %c0_19, %c0_20], %99 {strides = array<i32>} : memref<4x4x32xbf16, #tpu.memory_space<vmem>>, vector<4x4x32xbf16>,
    return
  }
  func.func @transform_0(%arg0: i32, %arg1: i32) -> (i32, i32, i32, i32) {
    %c2_i32 = arith.constant 2 : i32
    %0 = arith.muli %arg0, %c2_i32 : i32
    %1 = arith.addi %0, %arg1 : i32
    %c0_i32 = arith.constant 0 : i32
    %c0_i32_0 = arith.constant 0 : i32
    %c0_i32_1 = arith.constant 0 : i32
    %c0_i32_2 = arith.constant 0 : i32
    return %1, %c0_i32, %c0_i32_0, %c0_i32_1 : i32, i32, i32, i32
  }
  func.func @transform_1(%arg0: i32, %arg1: i32) -> (i32, i32, i32, i32) {
    %c8_i32 = arith.constant 8 : i32
    %0 = arith.muli %arg0, %c8_i32 : i32
    %c1_i32 = arith.constant 1 : i32
    %1 = arith.addi %arg1, %c1_i32 : i32
    %c4_i32 = arith.constant 4 : i32
    %2 = arith.muli %c4_i32, %1 : i32
    %3 = arith.addi %0, %2 : i32
    %c0_i32 = arith.constant 0 : i32
    %c0_i32_0 = arith.constant 0 : i32
    %c0_i32_1 = arith.constant 0 : i32
    %c0_i32_2 = arith.constant 0 : i32
    return %3, %c0_i32, %c0_i32_0, %c0_i32_1 : i32, i32, i32, i32
  }
  func.func @transform_2(%arg0: i32, %arg1: i32) -> (i32, i32) {
    %c0_i32 = arith.constant 0 : i32
    %c0_i32_0 = arith.constant 0 : i32
    %c0_i32_1 = arith.constant 0 : i32
    return %c0_i32, %c0_i32_0 : i32, i32
  }
  func.func @transform_3(%arg0: i32, %arg1: i32) -> (i32, i32) {
    %c0_i32 = arith.constant 0 : i32
    %c0_i32_0 = arith.constant 0 : i32
    %c0_i32_1 = arith.constant 0 : i32
    return %c0_i32, %c0_i32_0 : i32, i32
  }
  func.func @transform_4(%arg0: i32, %arg1: i32) -> (i32, i32) {
    %c0_i32 = arith.constant 0 : i32
    %c0_i32_0 = arith.constant 0 : i32
    %c0_i32_1 = arith.constant 0 : i32
    return %c0_i32, %c0_i32_0 : i32, i32
  }
  func.func @transform_5(%arg0: i32, %arg1: i32) -> (i32, i32) {
    %c0_i32 = arith.constant 0 : i32
    %c0_i32_0 = arith.constant 0 : i32
    %c0_i32_1 = arith.constant 0 : i32
    return %c0_i32, %c0_i32_0 : i32, i32
  }
  func.func @transform_6(%arg0: i32, %arg1: i32) -> (i32, i32, i32) {
    %c1_i32 = arith.constant 1 : i32
    %0 = arith.muli %arg0, %c1_i32 : i32
    %1 = arith.addi %0, %arg1 : i32
    %c0_i32 = arith.constant 0 : i32
    %c0_i32_0 = arith.constant 0 : i32
    %c0_i32_1 = arith.constant 0 : i32
    return %1, %c0_i32, %c0_i32_0 : i32, i32, i32
  }
}

</mosaic_0001>

<bundles_post_ra>
// kernel: learning_to_downsample.3
= control target key start
LH: loop header
LB: loop body
LE: loop exit
PB: predicated region body
PF: predicated region fallthrough
CT: control target
= control target key end

     0   :  { %s999_s12 = smov 0   ;;  %s1166_s0 = inlined_call_operand.vmem [shape: bf16[512,27], index: 0, kind: input, shape index: {}]   ;;  %s1167_s1 = inlined_call_operand.vmem [shape: bf16[27,8], index: 1, kind: input, shape index: {}]   ;;  %s1168_s2 = inlined_call_operand.vmem [shape: f32[1,8], index: 2, kind: input, shape index: {}]   ;;  %s1169_s3 = inlined_call_operand.vmem [shape: bf16[512,8], index: 3, kind: output, shape index: {}]  }
   0x1 LB: > { %s775_s13 = sadd.s32 4294967295, %s976_s12   ;;  %p779_p0 = scmp.ge.s32.totalorder %s976_s12, 1  ;;  %s976_s12 = sphi %s999_s12, %s13_s12  }
   0x2   : > { %p138_p1 = scmp.lt.s32.totalorder %s976_s12, 3 }
   0x4   : > { %p139_p2 = pnand %p779_p0, %p138_p1 }
   0x5   : > { %v952_v0 = vld [vmem:[%s1167_s1] sm:$0xff] (!%p139_p2)   ;;  %vm358_vm0 = vcmask (!%p139_p2), 1044480   ;;  %v953_v1 = vld [vmem:[%s1167_s1 + $0x8] sm:$0x3f] (!%p139_p2)   ;;  %vm359_vm1 = vcmask (!%p139_p2), 1045504   ;;  %s780_s18 = sshll.u32 (!%p139_p2), %s775_s13, 5 }
   0x6   : > { %142 = sbr.rel (%p139_p2) target bundleno = 265 (0x109), region = 32  ;;  %903 = vmatprep.subr.bf16.mxu0 (!%p139_p2), %v952_v0  ;;  %939 = vmatprep.subr.bf16.mxu1 (!%p139_p2), %v952_v0  ;;  %v978_v2 = vmov (!%p139_p2), 65535   ;;  %p163_p3 = scmp.lt.s32.totalorder (!%p139_p2), %s780_s18, 63  ;;  %vm309_vm2 = vcmask (!%p139_p2), 220160   ;;  %v1058_v22 = vld [vmem:[%s1168_s2] ss:$0 sm:$0xff] (!%p139_p2) }
   0x7   : > { %904 = vmatpush3.bf16.msra.mxu0 (!%p139_p2), %v952_v0  ;;  %941 = vmatpush3.bf16.msra.mxu1 (!%p139_p2), %v952_v0  ;;  %v360_v3 = vsel (!%p139_p2), %vm358_vm0, 4294967295, %v978_v2  ;;  %vm686_vm3 = vcmask (!%p139_p2), 60416  }
   0x8   : > { %v361_v4 = vsel (!%p139_p2), %vm359_vm1, %v360_v3, 0 }
   0x9   : > { %v363_v5 = vand.u32 (!%p139_p2), %v953_v1, %v361_v4 }
   0xb   : > { %905 = vmatprep.subr.bf16.mxu0 (!%p139_p2), %v363_v5  ;;  %940 = vmatprep.subr.bf16.mxu1 (!%p139_p2), %v363_v5 }
   0xc   : > { %906 = vmatpush3.bf16.msra.mxu0 (!%p139_p2), %v363_v5  ;;  %942 = vmatpush3.bf16.msra.mxu1 (!%p139_p2), %v363_v5 }
   0xd   : > { %s1171_s18 = smov (!%p163_p3, %s780_s18), 63 }
   0xe   : > { %s781_s19 = sshll.u32 %s1171_s18, 2 }
   0xf   : > { %s1021_s22 = scalar_lea.vmem %s1166_s0, %s781_s19  ;;  %s1070_s27 = scalar_lea.vmem %s1169_s3, %s781_s19 }
  0x10   : > { %v954_v6 = vld [vmem:[%s1021_s22] sm:$0xff]   ;;  %v956_v8 = vld [vmem:[%s1021_s22 + $0x8] sm:$0xff]   ;;  %v958_v10 = vld [vmem:[%s1021_s22 + $0x10] sm:$0xff]  }
  0x11   : > { %v955_v7 = vld [vmem:[%s1021_s22 + $0x40] sm:$0xff]   ;;  %907 = vmatprep.mubr.msk.bf16.mxu0 %vm309_vm2, %v954_v6  ;;  %v957_v9 = vld [vmem:[%s1021_s22 + $0x48] sm:$0xff]   ;;  %v959_v11 = vld [vmem:[%s1021_s22 + $0x50] sm:$0xff]  }
  0x12   : > { %923 = vmatprep.mubr.msk.bf16.mxu1 %vm309_vm2, %v955_v7  ;;  %908 = vmatmul.mubr.msk.bf16.vlgmr.msra.gmra.mrb[0].mxu0 %vm309_vm2, %v956_v8  ;;  %v960_v12 = vld [vmem:[%s1021_s22 + $0x18] sm:$0xff]   ;;  %v962_v14 = vld [vmem:[%s1021_s22 + $0x20] sm:$0xff]   ;;  %v964_v16 = vld [vmem:[%s1021_s22 + $0x28] sm:$0xff]  }
  0x13   : > { %924 = vmatmul.mubr.msk.bf16.vlgmr.msra.gmra.mrb[0].mxu1 %vm309_vm2, %v957_v9  ;;  %911 = vmatprep.mubr.msk.bf16.mxu0 %vm309_vm2, %v958_v10  ;;  %v961_v13 = vld [vmem:[%s1021_s22 + $0x58] sm:$0xff]   ;;  %v963_v15 = vld [vmem:[%s1021_s22 + $0x60] sm:$0xff]   ;;  %v965_v17 = vld [vmem:[%s1021_s22 + $0x68] sm:$0xff]  }
  0x14   : > { %927 = vmatprep.mubr.msk.bf16.mxu1 %vm309_vm2, %v959_v11  ;;  %v966_v18 = vld [vmem:[%s1021_s22 + $0x30] sm:$0xff]   ;;  %v968_v20 = vld [vmem:[%s1021_s22 + $0x38] sm:$0xff]  }
  0x15   : > { %v967_v19 = vld [vmem:[%s1021_s22 + $0x70] sm:$0xff]   ;;  %v969_v21 = vld [vmem:[%s1021_s22 + $0x78] sm:$0xff]  }
  0x1a   : > { %912 = vmatmul.mubr.msk.bf16.gmra.mrb[4].mxu0 %vm309_vm2, %v960_v12 }
  0x1b   : > { %928 = vmatmul.mubr.msk.bf16.gmra.mrb[4].mxu1 %vm309_vm2, %v961_v13  ;;  %915 = vmatprep.mubr.msk.bf16.mxu0 %vm309_vm2, %v962_v14 }
  0x1c   : > { %931 = vmatprep.mubr.msk.bf16.mxu1 %vm309_vm2, %v963_v15 }
  0x22   : > { %916 = vmatmul.mubr.msk.bf16.gmra.mrb[8].mxu0 %vm309_vm2, %v964_v16 }
  0x23   : > { %932 = vmatmul.mubr.msk.bf16.gmra.mrb[8].mxu1 %vm309_vm2, %v965_v17  ;;  %919 = vmatprep.mubr.msk.bf16.mxu0 %vm309_vm2, %v966_v18 }
  0x24   : > { %935 = vmatprep.mubr.msk.bf16.mxu1 %vm309_vm2, %v967_v19 }
  0x2a   : > { %920 = vmatmul.mubr.msk.bf16.gmra.mrb[12].mxu0 %vm309_vm2, %v968_v20 }
  0x2b   : > { %936 = vmatmul.mubr.msk.bf16.gmra.mrb[12].mxu1 %vm309_vm2, %v969_v21 }
  0xe5   : > { %v909_v23 = vpop.f32.mrb[0].mxu0 }
  0xe6   : > { %v408_v24 = vadd.f32 %v909_v23, %v1058_v22  ;;  %v925_v25 = vpop.f32.mrb[0].mxu1  ;;  %v399_v26 = vpop.f32.mrb[1].mxu0 }
  0xe7   : > { %v472_v27 = vadd.f32 %v925_v25, %v1058_v22  ;;  %v400_v28 = vadd.f32 %v1058_v22, %v399_v26  ;;  %v463_v29 = vpop.f32.mrb[1].mxu1  ;;  %v910_v30 = vpop.f32.mrb[2].mxu0 }
  0xe8   : > { %v528_v31 = vmax.f32 %v408_v24, 0.0  ;;  %v464_v32 = vadd.f32 %v1058_v22, %v463_v29  ;;  %v411_v33 = vadd.f32 %v910_v30, %v1058_v22  ;;  %v926_v34 = vpop.f32.mrb[2].mxu1  ;;  %v402_v35 = vpop.f32.mrb[3].mxu0 }
  0xe9   : > { %v544_v36 = vmax.f32 %v472_v27, 0.0  ;;  %v526_v37 = vmax.f32 %v400_v28, 0.0  ;;  %v475_v38 = vadd.f32 %v926_v34, %v1058_v22  ;;  %v403_v39 = vadd.f32 %v1058_v22, %v402_v35  ;;  %v466_v40 = vpop.f32.mrb[3].mxu1 }
  0xea   : > { %v855_v41 = vpack.c.bf16 %v528_v31, %v528_v31  ;;  %v542_v42 = vmax.f32 %v464_v32, 0.0  ;;  %v529_v43 = vmax.f32 %v411_v33, 0.0  ;;  %v467_v44 = vadd.f32 %v1058_v22, %v466_v40 }
  0xeb   : > { %v871_v45 = vpack.c.bf16 %v544_v36, %v544_v36  ;;  %v853_v46 = vpack.c.bf16 %v526_v37, %v526_v37  ;;  %v545_v47 = vmax.f32 %v475_v38, 0.0  ;;  %v527_v48 = vmax.f32 %v403_v39, 0.0 }
  0xec   : > { %689 = vst.msk [vmem:[%s1070_s27 + $0x8] sm:$0xf] %vm686_vm3, %v855_v41  ;;  %v869_v49 = vpack.c.bf16 %v542_v42, %v542_v42  ;;  %v856_v50 = vpack.c.bf16 %v529_v43, %v529_v43  ;;  %v543_v51 = vmax.f32 %v467_v44, 0.0 }
  0xed   : > { %705 = vst.msk [vmem:[%s1070_s27 + $0x48] sm:$0xf] %vm686_vm3, %v871_v45  ;;  %687 = vst.msk [vmem:[%s1070_s27] sm:$0xf] %vm686_vm3, %v853_v46  ;;  %v872_v52 = vpack.c.bf16 %v545_v47, %v545_v47  ;;  %v854_v53 = vpack.c.bf16 %v527_v48, %v527_v48  ;;  %v913_v54 = vpop.f32.mrb[4].mxu0 }
  0xee   : > { %703 = vst.msk [vmem:[%s1070_s27 + $0x40] sm:$0xf] %vm686_vm3, %v869_v49  ;;  %690 = vst.msk [vmem:[%s1070_s27 + $0xc] sm:$0xf] %vm686_vm3, %v856_v50  ;;  %v870_v55 = vpack.c.bf16 %v543_v51, %v543_v51  ;;  %v424_v56 = vadd.f32 %v913_v54, %v1058_v22  ;;  %v929_v57 = vpop.f32.mrb[4].mxu1  ;;  %v415_v58 = vpop.f32.mrb[5].mxu0 }
  0xef   : > { %706 = vst.msk [vmem:[%s1070_s27 + $0x4c] sm:$0xf] %vm686_vm3, %v872_v52  ;;  %688 = vst.msk [vmem:[%s1070_s27 + $0x4] sm:$0xf] %vm686_vm3, %v854_v53  ;;  %v488_v59 = vadd.f32 %v929_v57, %v1058_v22  ;;  %v416_v60 = vadd.f32 %v1058_v22, %v415_v58  ;;  %v479_v61 = vpop.f32.mrb[5].mxu1  ;;  %v914_v62 = vpop.f32.mrb[6].mxu0 }
  0xf0   : > { %704 = vst.msk [vmem:[%s1070_s27 + $0x44] sm:$0xf] %vm686_vm3, %v870_v55  ;;  %v532_v63 = vmax.f32 %v424_v56, 0.0  ;;  %v480_v0 = vadd.f32 %v1058_v22, %v479_v61  ;;  %v427_v1 = vadd.f32 %v914_v62, %v1058_v22  ;;  %v930_v2 = vpop.f32.mrb[6].mxu1  ;;  %v418_v3 = vpop.f32.mrb[7].mxu0 }
  0xf1   : > { %v548_v4 = vmax.f32 %v488_v59, 0.0  ;;  %v530_v5 = vmax.f32 %v416_v60, 0.0  ;;  %v491_v6 = vadd.f32 %v930_v2, %v1058_v22  ;;  %v419_v7 = vadd.f32 %v1058_v22, %v418_v3  ;;  %v482_v8 = vpop.f32.mrb[7].mxu1 }
  0xf2   : > { %v859_v9 = vpack.c.bf16 %v532_v63, %v532_v63  ;;  %v546_v10 = vmax.f32 %v480_v0, 0.0  ;;  %v533_v11 = vmax.f32 %v427_v1, 0.0  ;;  %v483_v12 = vadd.f32 %v1058_v22, %v482_v8 }
  0xf3   : > { %v875_v13 = vpack.c.bf16 %v548_v4, %v548_v4  ;;  %v857_v14 = vpack.c.bf16 %v530_v5, %v530_v5  ;;  %v549_v15 = vmax.f32 %v491_v6, 0.0  ;;  %v531_v16 = vmax.f32 %v419_v7, 0.0 }
  0xf4   : > { %693 = vst.msk [vmem:[%s1070_s27 + $0x18] sm:$0xf] %vm686_vm3, %v859_v9  ;;  %v873_v17 = vpack.c.bf16 %v546_v10, %v546_v10  ;;  %v860_v18 = vpack.c.bf16 %v533_v11, %v533_v11  ;;  %v547_v19 = vmax.f32 %v483_v12, 0.0 }
  0xf5   : > { %709 = vst.msk [vmem:[%s1070_s27 + $0x58] sm:$0xf] %vm686_vm3, %v875_v13  ;;  %691 = vst.msk [vmem:[%s1070_s27 + $0x10] sm:$0xf] %vm686_vm3, %v857_v14  ;;  %v876_v20 = vpack.c.bf16 %v549_v15, %v549_v15  ;;  %v858_v21 = vpack.c.bf16 %v531_v16, %v531_v16  ;;  %v917_v23 = vpop.f32.mrb[8].mxu0 }
  0xf6   : > { %707 = vst.msk [vmem:[%s1070_s27 + $0x50] sm:$0xf] %vm686_vm3, %v873_v17  ;;  %694 = vst.msk [vmem:[%s1070_s27 + $0x1c] sm:$0xf] %vm686_vm3, %v860_v18  ;;  %v874_v24 = vpack.c.bf16 %v547_v19, %v547_v19  ;;  %v440_v25 = vadd.f32 %v917_v23, %v1058_v22  ;;  %v933_v26 = vpop.f32.mrb[8].mxu1  ;;  %v431_v27 = vpop.f32.mrb[9].mxu0 }
  0xf7   : > { %710 = vst.msk [vmem:[%s1070_s27 + $0x5c] sm:$0xf] %vm686_vm3, %v876_v20  ;;  %692 = vst.msk [vmem:[%s1070_s27 + $0x14] sm:$0xf] %vm686_vm3, %v858_v21  ;;  %v504_v28 = vadd.f32 %v933_v26, %v1058_v22  ;;  %v432_v29 = vadd.f32 %v1058_v22, %v431_v27  ;;  %v495_v30 = vpop.f32.mrb[9].mxu1  ;;  %v918_v31 = vpop.f32.mrb[10].mxu0 }
  0xf8   : > { %708 = vst.msk [vmem:[%s1070_s27 + $0x54] sm:$0xf] %vm686_vm3, %v874_v24  ;;  %v536_v32 = vmax.f32 %v440_v25, 0.0  ;;  %v496_v33 = vadd.f32 %v1058_v22, %v495_v30  ;;  %v443_v34 = vadd.f32 %v918_v31, %v1058_v22  ;;  %v934_v35 = vpop.f32.mrb[10].mxu1  ;;  %v434_v36 = vpop.f32.mrb[11].mxu0 }
  0xf9   : > { %v552_v37 = vmax.f32 %v504_v28, 0.0  ;;  %v534_v38 = vmax.f32 %v432_v29, 0.0  ;;  %v507_v39 = vadd.f32 %v934_v35, %v1058_v22  ;;  %v435_v40 = vadd.f32 %v1058_v22, %v434_v36  ;;  %v498_v41 = vpop.f32.mrb[11].mxu1 }
  0xfa   : > { %v863_v42 = vpack.c.bf16 %v536_v32, %v536_v32  ;;  %v550_v43 = vmax.f32 %v496_v33, 0.0  ;;  %v537_v44 = vmax.f32 %v443_v34, 0.0  ;;  %v499_v45 = vadd.f32 %v1058_v22, %v498_v41 }
  0xfb   : > { %v879_v46 = vpack.c.bf16 %v552_v37, %v552_v37  ;;  %v861_v47 = vpack.c.bf16 %v534_v38, %v534_v38  ;;  %v553_v48 = vmax.f32 %v507_v39, 0.0  ;;  %v535_v49 = vmax.f32 %v435_v40, 0.0 }
  0xfc   : > { %697 = vst.msk [vmem:[%s1070_s27 + $0x28] sm:$0xf] %vm686_vm3, %v863_v42  ;;  %v877_v50 = vpack.c.bf16 %v550_v43, %v550_v43  ;;  %v864_v51 = vpack.c.bf16 %v537_v44, %v537_v44  ;;  %v551_v52 = vmax.f32 %v499_v45, 0.0 }
  0xfd   : > { %713 = vst.msk [vmem:[%s1070_s27 + $0x68] sm:$0xf] %vm686_vm3, %v879_v46  ;;  %695 = vst.msk [vmem:[%s1070_s27 + $0x20] sm:$0xf] %vm686_vm3, %v861_v47  ;;  %v880_v53 = vpack.c.bf16 %v553_v48, %v553_v48  ;;  %v862_v54 = vpack.c.bf16 %v535_v49, %v535_v49  ;;  %v921_v55 = vpop.f32.mrb[12].mxu0 }
  0xfe   : > { %711 = vst.msk [vmem:[%s1070_s27 + $0x60] sm:$0xf] %vm686_vm3, %v877_v50  ;;  %698 = vst.msk [vmem:[%s1070_s27 + $0x2c] sm:$0xf] %vm686_vm3, %v864_v51  ;;  %v878_v56 = vpack.c.bf16 %v551_v52, %v551_v52  ;;  %v456_v57 = vadd.f32 %v921_v55, %v1058_v22  ;;  %v937_v58 = vpop.f32.mrb[12].mxu1  ;;  %v447_v59 = vpop.f32.mrb[13].mxu0 }
  0xff   : > { %714 = vst.msk [vmem:[%s1070_s27 + $0x6c] sm:$0xf] %vm686_vm3, %v880_v53  ;;  %696 = vst.msk [vmem:[%s1070_s27 + $0x24] sm:$0xf] %vm686_vm3, %v862_v54  ;;  %v520_v60 = vadd.f32 %v937_v58, %v1058_v22  ;;  %v448_v61 = vadd.f32 %v1058_v22, %v447_v59  ;;  %v511_v62 = vpop.f32.mrb[13].mxu1  ;;  %v922_v63 = vpop.f32.mrb[14].mxu0 }
 0x100   : > { %712 = vst.msk [vmem:[%s1070_s27 + $0x64] sm:$0xf] %vm686_vm3, %v878_v56  ;;  %v540_v0 = vmax.f32 %v456_v57, 0.0  ;;  %v512_v1 = vadd.f32 %v1058_v22, %v511_v62  ;;  %v459_v2 = vadd.f32 %v922_v63, %v1058_v22  ;;  %v938_v3 = vpop.f32.mrb[14].mxu1  ;;  %v450_v4 = vpop.f32.mrb[15].mxu0 }
 0x101   : > { %v556_v5 = vmax.f32 %v520_v60, 0.0  ;;  %v538_v6 = vmax.f32 %v448_v61, 0.0  ;;  %v523_v7 = vadd.f32 %v938_v3, %v1058_v22  ;;  %v451_v8 = vadd.f32 %v1058_v22, %v450_v4  ;;  %v514_v9 = vpop.f32.mrb[15].mxu1 }
 0x102   : > { %v867_v10 = vpack.c.bf16 %v540_v0, %v540_v0  ;;  %v554_v11 = vmax.f32 %v512_v1, 0.0  ;;  %v541_v12 = vmax.f32 %v459_v2, 0.0  ;;  %v515_v13 = vadd.f32 %v1058_v22, %v514_v9 }
 0x103   : > { %v883_v14 = vpack.c.bf16 %v556_v5, %v556_v5  ;;  %v865_v15 = vpack.c.bf16 %v538_v6, %v538_v6  ;;  %v557_v16 = vmax.f32 %v523_v7, 0.0  ;;  %v539_v17 = vmax.f32 %v451_v8, 0.0 }
 0x104   : > { %701 = vst.msk [vmem:[%s1070_s27 + $0x38] sm:$0xf] %vm686_vm3, %v867_v10  ;;  %v881_v18 = vpack.c.bf16 %v554_v11, %v554_v11  ;;  %v868_v19 = vpack.c.bf16 %v541_v12, %v541_v12  ;;  %v555_v20 = vmax.f32 %v515_v13, 0.0 }
 0x105   : > { %717 = vst.msk [vmem:[%s1070_s27 + $0x78] sm:$0xf] %vm686_vm3, %v883_v14  ;;  %699 = vst.msk [vmem:[%s1070_s27 + $0x30] sm:$0xf] %vm686_vm3, %v865_v15  ;;  %v884_v21 = vpack.c.bf16 %v557_v16, %v557_v16  ;;  %v866_v23 = vpack.c.bf16 %v539_v17, %v539_v17 }
 0x106   : > { %715 = vst.msk [vmem:[%s1070_s27 + $0x70] sm:$0xf] %vm686_vm3, %v881_v18  ;;  %702 = vst.msk [vmem:[%s1070_s27 + $0x3c] sm:$0xf] %vm686_vm3, %v868_v19  ;;  %v882_v22 = vpack.c.bf16 %v555_v20, %v555_v20 }
 0x107   : > { %718 = vst.msk [vmem:[%s1070_s27 + $0x7c] sm:$0xf] %vm686_vm3, %v884_v21  ;;  %700 = vst.msk [vmem:[%s1070_s27 + $0x34] sm:$0xf] %vm686_vm3, %v866_v23 }
 0x108   : > { %716 = vst.msk [vmem:[%s1070_s27 + $0x74] sm:$0xf] %vm686_vm3, %v882_v22 }
 0x109 PF: > { %s13_s12 = sadd.s32 1, %s976_s12  }
 0x10a   : > { %p10_p4 = scmp.ge.s32.totalorder %s13_s12, 4  }
 0x10c   :  { %12 = sbr.rel (!%p10_p4) target bundleno = 1 (0x1), region = 62 }

// kernel: learning_to_downsample.4
= control target key start
LH: loop header
LB: loop body
LE: loop exit
PB: predicated region body
PF: predicated region fallthrough
CT: control target
= control target key end

     0   :  { %s1255_s21 = smov 0   ;;  %s1257_s22 = smov 0   ;;  %s1790_s0 = inlined_call_operand.vmem [shape: bf16[32,2,12,16], index: 0, kind: input, shape index: {}, may-alias: {0,1}]   ;;  %s1791_s1 = inlined_call_operand.vmem [shape: bf16[32,2,12,16], index: 1, kind: input, shape index: {}, may-alias: {0,1}]   ;;  %s1792_s2 = inlined_call_operand.vmem [shape: f32[9,8], index: 2, kind: input, shape index: {}]   ;;  %s1793_s3 = inlined_call_operand.vmem [shape: f32[1,8], index: 3, kind: input, shape index: {}]   ;;  %s1794_s4 = inlined_call_operand.vmem [shape: bf16[8,16], index: 4, kind: input, shape index: {}]   ;;  %s1795_s5 = inlined_call_operand.vmem [shape: f32[1,16], index: 5, kind: input, shape index: {}]   ;;  %s1796_s6 = inlined_call_operand.vmem [shape: bf16[16,8,16], index: 6, kind: output, shape index: {}]  }
   0x1   :  { %s1259_s23 = smov 0  }
   0x2 LB: > { %s28_s24 = sadd.s32 1, %s1212_s22  ;;  %p1119_p0 = scmp.ge.s32.totalorder %s1216_s23, 1  ;;  %s1216_s23 = sphi %s1259_s23, %s16_s23   ;;  %s1212_s22 = sphi %s1257_s22, %s1828_s22   ;;  %s1208_s21 = sphi %s1255_s21, %s1827_s21  }
   0x3   : > { %p30_p1 = scmp.ge.s32.totalorder %s28_s24, 2  ;;  %p262_p2 = scmp.lt.s32.totalorder %s1216_s23, 3 }
   0x5   : > { %s1830_s24 = smov (%p30_p1, %s28_s24), 0  ;;  %p263_p3 = pnand %p1119_p0, %p262_p2 }
   0x7   : > { %266 = sbr.rel (%p263_p3) target bundleno = 530 (0x212), region = 44 }
   0xe   : > { %v382_v0 = vlaneseq  ;;  %v372_v2 = vld [vmem:[%s1792_s2] sm:$0xff]  ;;  %s1218_s27 = smov 8   ;;  %s1289_s28 = sshll.u32 %s1208_s21, 4  ;;  %vm502_vm0 = vcmask 1046528   ;;  %vm937_vm1 = vcmask 1043456   ;;  %vm924_vm2 = vcmask 64512  }
   0xf   : > { %p308_p4 = scmp.lt.s32.totalorder %s1289_s28, 31  ;;  %s1219_s10 = smov 120   ;;  %vm1022_vm3 = vcmask 125952  }
  0x10   : > { %v383_v1 = vshrl.u32 %v382_v0, 7  ;;  %s319_s11 = sadd.s32 8, %s1289_s28 }
  0x11   : > { %s309_s29 = scalar_select %p308_p4, %s1289_s28, 31 }
  0x12   : > { %v384_v3 = vsub.s32 0, %v383_v1  ;;  %v404_v4 = vsub.s32 1, %v383_v1  ;;  %v468_v5 = vsub.s32 2, %v383_v1  ;;  %v553_v6 = vsub.s32 3, %v383_v1  ;;  %p1495_p5 = scmp.lt.s32.totalorder %s319_s11, 31 }
  0x13   : > { %v637_v7 = vsub.s32 5, %v383_v1  ;;  %v714_v8 = vsub.s32 6, %v383_v1  ;;  %v573_v9 = vsub.s32 4, %v383_v1  ;;  %v734_v10 = vsub.s32 7, %v383_v1  ;;  %s1143_s30 = sshll.u32 %s309_s29, 4 }
  0x14   : > { %v405_v11 = vrot.slane %v372_v2, %v404_v4  ;;  %v1278_v12 = vrot.slane %v372_v2, %v468_v5  ;;  %v1280_v13 = vrot.slane %v372_v2, %v553_v6  ;;  %v1282_v14 = vrot.slane %v372_v2, %v384_v3  ;;  %s1296_s9 = scalar_lea.vmem %s1790_s0, %s1143_s30  ;;  %s1832_s11 = smov (!%p1495_p5, %s319_s11), 31 }
  0x15   : > { %v1284_v15 = vrot.slane %v372_v2, %v637_v7  ;;  %v1286_v16 = vrot.slane %v372_v2, %v714_v8  ;;  %v735_v17 = vrot.slane %v372_v2, %v734_v10  ;;  %v574_v18 = vrot.slane %v372_v2, %v573_v9  ;;  %v342_v19 = vld [vmem:[%s1296_s9] ss:$16 sps:$4 sm:$0xff]   ;;  %v339_v20 = vld [vmem:[%s1296_s9 + $0x4] sm:$0x3]  ;;  %v344_v26 = vld [vmem:[%s1296_s9 + $0x8] ss:$16 sps:$4 sm:$0xff]  }
  0x16   : > { %407 = vrot.lane.b32.xlu0 %v405_v11, %s1218_s27  ;;  %v1300_v21 = vunpack.c.l.bf16 %v342_v19  ;;  %v358_v22 = vld [vmem:[%s1296_s9 + $0x40] ss:$16 sps:$4 sm:$0xff]   ;;  %v458_v23 = vunpack.c.l.bf16 %v339_v20  ;;  %v1303_v24 = vunpack.c.h.bf16 %v342_v19  ;;  %v1319_v32 = vld [vmem:[%s1296_s9 + $0x54] sm:$0x3]  ;;  %v1322_v33 = vld [vmem:[%s1296_s9 + $0x44] sm:$0x3]  ;;  %v1330_v40 = vunpack.c.h.bf16 %v344_v26 }
  0x17   : > { %737 = vrot.lane.b32.xlu1 %v735_v17, %s1218_s27  ;;  %v350_v25 = vld [vmem:[%s1296_s9 + $0x20] ss:$16 sps:$4 sm:$0xff]   ;;  %v1310_v29 = vunpack.c.h.bf16 %v358_v22  ;;  %v1312_v30 = vunpack.c.l.bf16 %v358_v22  ;;  %1808 = vst [vmem:[#allocation2_spill] sm:$0xff] %v1322_v33  ;;  %v1800_v36 = vunpack.c.l.bf16 %v1319_v32  ;;  %v1799_v37 = vunpack.c.l.bf16 %v1322_v33  ;;  %v360_v42 = vld [vmem:[%s1296_s9 + $0x48] ss:$16 sps:$4 sm:$0xff]   ;;  %s1144_s13 = sshll.u32 %s1832_s11, 4 }
  0x18   : > { %v470_v27 = vmul.f32 %v1278_v12, %v1300_v21  ;;  %v471_v28 = vmul.f32 %v1278_v12, %v458_v23  ;;  %v1316_v31 = vmul.f32 %v1282_v14, %v1300_v21  ;;  %v1326_v38 = vunpack.c.h.bf16 %v350_v25  ;;  %v1357_v50 = vld [vmem:[%s1296_s9 + $0x34] sm:$0x3]  ;;  %v1360_v51 = vld [vmem:[%s1296_s9 + $0x24] sm:$0x3]  ;;  %v366_v57 = vld [vmem:[%s1296_s9 + $0x60] ss:$16 sps:$4 sm:$0xff]   ;;  %s1580_s16 = scalar_lea.vmem %s1791_s1, %s1144_s13 }
  0x19   : > { %v1328_v39 = vunpack.c.l.bf16 %v350_v25  ;;  %v1332_v41 = vunpack.c.l.bf16 %v344_v26  ;;  %v1340_v44 = vmul.f32 %v1282_v14, %v1310_v29  ;;  %v480_v45 = vmul.f32 %v1278_v12, %v1310_v29  ;;  %1809 = vst [vmem:[#allocation3_spill] sm:$0xff] %v1357_v50  ;;  %v1399_v6 = vld [vmem:[%s1296_s9 + $0x74] sm:$0x3]  ;;  %v352_v10 = vld [vmem:[%s1296_s9 + $0x28] ss:$16 sps:$4 sm:$0xff]  }
  0x1a   : > { %576 = vrot.lane.b32.xlu0 %v574_v18, %s1218_s27  ;;  %v503_v34 = vrot.slane %v470_v27, 1  ;;  %v504_v35 = vrot.slane %v471_v28, 1  ;;  %v481_v46 = vmul.f32 %v1278_v12, %v1800_v36  ;;  %v1349_v47 = vmul.f32 %v1282_v14, %v1312_v30  ;;  %1810 = vst [vmem:[#allocation4_spill] sm:$0xff] %v1399_v6  ;;  %v368_v28 = vld [vmem:[%s1296_s9 + $0x68] ss:$16 sps:$4 sm:$0xff]   ;;  %s1127_s27 = sshll.u32 %s1208_s21, 3 }
  0x1b   : > { %v478_v48 = vmul.f32 %v1278_v12, %v1312_v30  ;;  %v479_v49 = vmul.f32 %v1278_v12, %v1799_v37  ;;  %v1364_v52 = vmul.f32 %v1280_v13, %v1330_v40  ;;  %v1366_v53 = vunpack.c.h.bf16 %v360_v42  ;;  %p331_p6 = scmp.lt.s32.totalorder %s1127_s27, 15 }
  0x1c   : > { %v1336_v43 = vsel %vm502_vm0, %v503_v34, %v504_v35  ;;  %v518_v54 = vrot.slane %v480_v45, 1  ;;  %v519_v55 = vrot.slane %v481_v46, 1  ;;  %v1798_v56 = vunpack.c.l.bf16 %v1357_v50  ;;  %v1429_v34 = vld [vmem:[%s1296_s9 + $0x64] sm:$0x3] }
  0x1d   : > { %v515_v58 = vrot.slane %v478_v48, 1  ;;  %v516_v59 = vrot.slane %v479_v49, 1  ;;  %v1801_v60 = vunpack.c.l.bf16 %v1360_v51  ;;  %v1373_v61 = vmul.f32 %v1280_v13, %v1332_v41  ;;  %s1834_s27 = smov (!%p331_p6, %s1127_s27), 15 }
  0x1e   : > { %v1376_v62 = vsel %vm502_vm0, %v518_v54, %v519_v55  ;;  %v1380_v63 = vmul.f32 %v1282_v14, %v1326_v38  ;;  %v476_v0 = vmul.f32 %v1278_v12, %v1326_v38  ;;  %v477_v1 = vmul.f32 %v1278_v12, %v1798_v56  ;;  %s1128_s30 = sshll.u32 %s1834_s27, 2 }
  0x1f   : > { %v1387_v2 = vunpack.c.l.bf16 %v360_v42  ;;  %v1390_v3 = vsel %vm502_vm0, %v515_v58, %v516_v59  ;;  %v1394_v4 = vmul.f32 %v1282_v14, %v1328_v39  ;;  %v474_v5 = vmul.f32 %v1278_v12, %v1328_v39 }
  0x20   : > { %v1401_v7 = vunpack.c.h.bf16 %v366_v57  ;;  %v512_v8 = vrot.slane %v476_v0, 1  ;;  %v513_v9 = vrot.slane %v477_v1, 1  ;;  %v475_v11 = vmul.f32 %v1278_v12, %v1801_v60 }
  0x21   : > { %v1797_v17 = vunpack.c.l.bf16 %v1399_v6  ;;  %v1410_v18 = vmul.f32 %v1280_v13, %v1366_v53  ;;  %v1414_v19 = vmul.f32 %v1280_v13, %v1387_v2  ;;  %v1431_v35 = vunpack.c.l.bf16 %v366_v57  ;;  %v357_v6 = vld [vmem:[%s1296_s9 + $0x4c] sm:$0x3] }
  0x22   : > { %1811 = vst [vmem:[#allocation5_spill] sm:$0xff] %v1401_v7  ;;  %v1417_v22 = vsel %vm502_vm0, %v512_v8, %v513_v9  ;;  %v1421_v23 = vmul.f32 %v1282_v14, %v1401_v7  ;;  %v484_v25 = vmul.f32 %v1278_v12, %v1401_v7  ;;  %v1433_v42 = vunpack.c.h.bf16 %v352_v10  ;;  %v345_v8 = vld [vmem:[%s1296_s9 + $0x1c] sm:$0x3] }
  0x23   : > { %v1437_v45 = vunpack.c.l.bf16 %v352_v10  ;;  %v509_v46 = vrot.slane %v474_v5, 1  ;;  %v510_v48 = vrot.slane %v475_v11, 1  ;;  %v1445_v55 = vunpack.c.h.bf16 %v368_v28 }
  0x24   : > { %v1447_v57 = vunpack.c.l.bf16 %v368_v28  ;;  %v1803_v58 = vunpack.c.l.bf16 %v1429_v34  ;;  %v524_v5 = vrot.slane %v484_v25, 1  ;;  %v361_v28 = vld [vmem:[%s1296_s9 + $0x5c] sm:$0x3]  ;;  %v1478_v56 = vmul.f32 %v1282_v14, %v1431_v35 }
  0x25   : > { %v482_v37 = vmul.f32 %v1278_v12, %v1431_v35  ;;  %v641_v36 = vmul.f32 %v1284_v15, %v1330_v40 }
  0x27   : > { %v674_v50 = vrot.slane %v641_v36, 1 }
  0x88   : > { %v408_v20 = vpop.permute.xlu0 %407 }
  0x89   : > { %v411_v26 = vmul.f32 %v408_v20, %v1303_v24  ;;  %v410_v27 = vmul.f32 %v408_v20, %v1300_v21  ;;  %v485_v21 = vmul.f32 %v1278_v12, %v1797_v17  ;;  %v415_v49 = vmul.f32 %v408_v20, %v1310_v29 }
  0x8a   : > { %v414_v59 = vmul.f32 %v408_v20, %v1312_v30  ;;  %v413_v0 = vmul.f32 %v408_v20, %v1326_v38  ;;  %v412_v1 = vmul.f32 %v408_v20, %v1328_v39  ;;  %v417_v9 = vmul.f32 %v408_v20, %v1401_v7 }
  0x8b   : > { %428 = vrot.lane.b32.xlu0 %v411_v26, %s1219_s10  ;;  %426 = vrot.lane.b32.xlu1 %v410_v27, %s1219_s10  ;;  %v416_v10 = vmul.f32 %v408_v20, %v1431_v35  ;;  %v341_v27 = vld [vmem:[%s1296_s9 + $0xc] sm:$0x3]  ;;  %v1474_v20 = vsel %vm502_vm0, %v509_v46, %v510_v48  ;;  %v525_v17 = vrot.slane %v485_v21, 1  ;;  %v639_v48 = vmul.f32 %v1284_v15, %v1332_v41 }
  0x8c   : > { %v1443_v54 = vpop.permute.xlu0 %576  ;;  %v627_v46 = vunpack.c.l.bf16 %v341_v27  ;;  %v632_v21 = vunpack.c.l.bf16 %v361_v28 }
  0x8d   : > { %v1458_v11 = vmul.f32 %v1443_v54, %v1330_v40  ;;  %v1462_v26 = vmul.f32 %v1443_v54, %v1332_v41  ;;  %v1470_v25 = vmul.f32 %v1443_v54, %v1366_v53  ;;  %v1488_v60 = vsel %vm502_vm0, %v524_v5, %v525_v17 }
  0x8e   : > { %v640_v41 = vmul.f32 %v1284_v15, %v627_v46  ;;  %v671_v17 = vrot.slane %v639_v48, 1  ;;  %v649_v5 = vmul.f32 %v1284_v15, %v1366_v53  ;;  %v650_v27 = vmul.f32 %v1284_v15, %v632_v21 }
  0x8f   : > { %436 = vrot.lane.b32.xlu0 %v415_v49, %s1219_s10  ;;  %434 = vrot.lane.b32.xlu1 %v414_v59, %s1219_s10  ;;  %v483_v49 = vmul.f32 %v1278_v12, %v1803_v58  ;;  %v628_v59 = vunpack.c.l.bf16 %v345_v8  ;;  %v521_v8 = vrot.slane %v482_v37, 1  ;;  %v353_v37 = vld [vmem:[%s1296_s9 + $0x3c] sm:$0x3]  ;;  %v1515_v48 = vmul.f32 %v1280_v13, %v1433_v42 }
  0x90   : > { %v686_v33 = vrot.slane %v649_v5, 1  ;;  %v687_v46 = vrot.slane %v650_v27, 1  ;;  %v630_v21 = vunpack.c.l.bf16 %v353_v37  ;;  %v1541_v37 = vmul.f32 %v1280_v13, %v1437_v45 }
  0x91   : > { %v522_v58 = vrot.slane %v483_v49, 1  ;;  %v642_v40 = vmul.f32 %v1284_v15, %v628_v59  ;;  %v631_v49 = vunpack.c.l.bf16 %v357_v6  ;;  %v349_v59 = vld [vmem:[%s1296_s9 + $0x2c] sm:$0x3] }
  0x92   : > { %v629_v5 = vunpack.c.l.bf16 %v349_v59 }
  0x93   : > { %432 = vrot.lane.b32.xlu0 %v413_v0, %s1219_s10  ;;  %430 = vrot.lane.b32.xlu1 %v412_v1, %s1219_s10  ;;  %v1508_v28 = vsel %vm502_vm0, %v521_v8, %v522_v58  ;;  %v675_v36 = vrot.slane %v642_v40, 1  ;;  %v647_v0 = vmul.f32 %v1284_v15, %v1387_v2  ;;  %v672_v1 = vrot.slane %v640_v41, 1  ;;  %v369_v8 = vld [vmem:[%s1296_s9 + $0x7c] sm:$0x3] }
  0x94   : > { %v648_v6 = vmul.f32 %v1284_v15, %v631_v49  ;;  %v1534_v41 = vsel %vm502_vm0, %v686_v33, %v687_v46  ;;  %v644_v49 = vmul.f32 %v1284_v15, %v629_v5  ;;  %v1549_v33 = vmul.f32 %v1280_v13, %v1445_v55 }
  0x95   : > { %v1524_v53 = vsel %vm502_vm0, %v674_v50, %v675_v36  ;;  %v683_v58 = vrot.slane %v647_v0, 1  ;;  %v1531_v40 = vsel %vm502_vm0, %v671_v17, %v672_v1  ;;  %v645_v50 = vmul.f32 %v1284_v15, %v1433_v42 }
  0x96   : > { %v684_v27 = vrot.slane %v648_v6, 1  ;;  %v646_v36 = vmul.f32 %v1284_v15, %v630_v21  ;;  %v634_v0 = vunpack.c.l.bf16 %v369_v8  ;;  %v653_v6 = vmul.f32 %v1284_v15, %v1445_v55 }
  0x97   : > { %440 = vrot.lane.b32.xlu0 %v417_v9, %s1219_s10  ;;  %438 = vrot.lane.b32.xlu1 %v416_v10, %s1219_s10  ;;  %v643_v9 = vmul.f32 %v1284_v15, %v1437_v45  ;;  %v365_v10 = vld [vmem:[%s1296_s9 + $0x6c] sm:$0x3]  ;;  %v680_v17 = vrot.slane %v645_v50, 1  ;;  %v678_v21 = vrot.slane %v644_v49, 1  ;;  %v1564_v8 = vmul.f32 %v1280_v13, %v1447_v57 }
  0x98   : > { %v1553_v59 = vsel %vm502_vm0, %v683_v58, %v684_v27  ;;  %v681_v1 = vrot.slane %v646_v36, 1  ;;  %v654_v50 = vmul.f32 %v1284_v15, %v634_v0  ;;  %v633_v58 = vunpack.c.l.bf16 %v365_v10  ;;  %v370_v0 = vld [vmem:[%s1580_s16] sm:$0xf] }
  0x99   : > { %v677_v46 = vrot.slane %v643_v9, 1  ;;  %v692_v27 = vrot.slane %v653_v6, 1  ;;  %v651_v36 = vmul.f32 %v1284_v15, %v1447_v57 }
  0x9a   : > { %v1567_v5 = vsel %vm502_vm0, %v680_v17, %v681_v1  ;;  %v693_v9 = vrot.slane %v654_v50, 1  ;;  %v652_v10 = vmul.f32 %v1284_v15, %v633_v58  ;;  %v1595_v1 = vmul.f32 %v1286_v16, %v1431_v35 }
  0x9b   : > { %597 = vrot.lane.b32.xlu0 %v1458_v11, %s1219_s10  ;;  %595 = vrot.lane.b32.xlu1 %v1462_v26, %s1219_s10  ;;  %v1573_v11 = vmul.f32 %v1286_v16, %v1328_v39  ;;  %v583_v26 = vmul.f32 %v1443_v54, %v1387_v2  ;;  %v1583_v13 = vsel %vm502_vm0, %v677_v46, %v678_v21  ;;  %v689_v17 = vrot.slane %v651_v36, 1 }
  0x9c   : > { %v1590_v2 = vsel %vm502_vm0, %v692_v27, %v693_v9  ;;  %v690_v49 = vrot.slane %v652_v10, 1  ;;  %v582_v46 = vmul.f32 %v1443_v54, %v1433_v42  ;;  %v581_v15 = vmul.f32 %v1443_v54, %v1437_v45  ;;  %v738_v45 = vpop.permute.xlu1 %737 }
  0x9d   : > { %v1610_v21 = vunpack.c.l.bf16 %v370_v0  ;;  %v1614_v50 = vmul.f32 %v1286_v16, %v1312_v30  ;;  %v1618_v42 = vmul.f32 %v1286_v16, %v1326_v38  ;;  %v586_v58 = vmul.f32 %v1443_v54, %v1445_v55 }
  0x9e   : > { %v1602_v6 = vsel %vm502_vm0, %v689_v17, %v690_v49  ;;  %v585_v27 = vmul.f32 %v1443_v54, %v1447_v57  ;;  %v740_v9 = vmul.f32 %v738_v45, %v1303_v24  ;;  %v1634_v10 = vmul.f32 %v1286_v16, %v1401_v7  ;;  %v896_v54 = vld [vmem:[%s1794_s4] sm:$0xf] }
  0x9f   : > { %605 = vrot.lane.b32.xlu0 %v1470_v25, %s1219_s10  ;;  %603 = vrot.lane.b32.xlu1 %v583_v26, %s1219_s10  ;;  %v1606_v25 = vmul.f32 %v1286_v16, %v1310_v29  ;;  %1813 = vst [vmem:[#allocation6_spill] sm:$0xff] %v1610_v21  ;;  %v1626_v36 = vmul.f32 %v1286_v16, %v1610_v21  ;;  %v939_v17 = vsel %vm937_vm1, %v896_v54, 0 }
  0xa0   : > { %v741_v26 = vmul.f32 %v738_v45, %v1328_v39  ;;  %1814 = vst [vmem:[#allocation7_spill] sm:$0xff] %v1634_v10  ;;  %v745_v55 = vmul.f32 %v738_v45, %v1431_v35  ;;  %v744_v57 = vmul.f32 %v738_v45, %v1310_v29  ;;  %1166 = vmatprep.subr.msk.bf16.mxu0 %vm937_vm1, %v896_v54 }
  0xa1   : > { %1167 = vmatprep.subr.msk.bf16.mxu1 %vm937_vm1, %v896_v54  ;;  %1155 = vmatpush3.bf16.msra.mxu0 %v939_v17  ;;  %v743_v49 = vmul.f32 %v738_v45, %v1312_v30  ;;  %v742_v0 = vmul.f32 %v738_v45, %v1326_v38 }
  0xa2   : > { %1165 = vmatpush3.bf16.msra.mxu1 %v939_v17 }
  0xa3   : > { %601 = vrot.lane.b32.xlu0 %v582_v46, %s1219_s10  ;;  %599 = vrot.lane.b32.xlu1 %v581_v15, %s1219_s10  ;;  %v747_v46 = vmul.f32 %v738_v45, %v1610_v21  ;;  %v746_v15 = vmul.f32 %v738_v45, %v1401_v7 }
  0xa7   : > { %609 = vrot.lane.b32.xlu0 %v586_v58, %s1219_s10  ;;  %607 = vrot.lane.b32.xlu1 %v585_v27, %s1219_s10  ;;  %v343_v58 = vld [vmem:[%s1296_s9 + $0x14] sm:$0x3]  ;;  %s1763_s9 = scalar_lea.vmem %s1796_s6, %s1128_s30 }
  0xa8   : > { %v459_v27 = vunpack.c.l.bf16 %v343_v58 }
  0xab   : > { %758 = vrot.lane.b32.xlu0 %v741_v26, %s1219_s10  ;;  %756 = vrot.lane.b32.xlu1 %v740_v9, %s1219_s10  ;;  %v472_v26 = vmul.f32 %v1278_v12, %v1303_v24  ;;  %v473_v9 = vmul.f32 %v1278_v12, %v459_v27 }
  0xad   : > { %v506_v54 = vrot.slane %v472_v26, 1 }
  0xaf   : > { %766 = vrot.lane.b32.xlu0 %v745_v55, %s1219_s10  ;;  %764 = vrot.lane.b32.xlu1 %v744_v57, %s1219_s10  ;;  %v507_v55 = vrot.slane %v473_v9, 1  ;;  %v387_v57 = vmul.f32 %v1282_v14, %v1303_v24 }
  0xb1   : > { %v508_v17 = vsel %vm502_vm0, %v506_v54, %v507_v55 }
  0xb3   : > { %762 = vrot.lane.b32.xlu0 %v743_v49, %s1219_s10  ;;  %760 = vrot.lane.b32.xlu1 %v742_v0, %s1219_s10 }
  0xb7   : > { %770 = vrot.lane.b32.xlu0 %v747_v46, %s1219_s10  ;;  %768 = vrot.lane.b32.xlu1 %v746_v15, %s1219_s10 }
  0xfd   : > { %v429_v49 = vpop.permute.xlu0 %428  ;;  %v427_v45 = vpop.permute.xlu1 %426 }
  0xfe   : > { %v451_v0 = vadd.f32 %v429_v49, %v387_v57  ;;  %v450_v46 = vadd.f32 %v427_v45, %v1316_v31 }
 0x100   : > { %v536_v15 = vadd.f32 %v508_v17, %v451_v0  ;;  %v535_v58 = vadd.f32 %v1336_v43, %v450_v46 }
 0x101   : > { %v437_v7 = vpop.permute.xlu0 %436  ;;  %v435_v21 = vpop.permute.xlu1 %434 }
 0x102   : > { %v455_v10 = vadd.f32 %v437_v7, %v1340_v44  ;;  %v454_v12 = vadd.f32 %v435_v21, %v1349_v47  ;;  %v564_v26 = vadd.f32 %v1364_v52, %v536_v15  ;;  %v563_v14 = vadd.f32 %v1373_v61, %v535_v58 }
 0x104   : > { %v540_v9 = vadd.f32 %v1376_v62, %v455_v10  ;;  %v539_v54 = vadd.f32 %v1390_v3, %v454_v12 }
 0x105   : > { %v433_v55 = vpop.permute.xlu0 %432  ;;  %v431_v57 = vpop.permute.xlu1 %430 }
 0x106   : > { %v453_v31 = vadd.f32 %v433_v55, %v1380_v63  ;;  %v452_v43 = vadd.f32 %v431_v57, %v1394_v4  ;;  %v568_v17 = vadd.f32 %v1410_v18, %v540_v9  ;;  %v567_v44 = vadd.f32 %v1414_v19, %v539_v54 }
 0x108   : > { %v538_v47 = vadd.f32 %v1417_v22, %v453_v31  ;;  %v537_v52 = vadd.f32 %v1474_v20, %v452_v43  ;;  %v716_v22 = vmul.f32 %v1286_v16, %v1303_v24 }
 0x109   : > { %v441_v7 = vpop.permute.xlu0 %440  ;;  %v439_v61 = vpop.permute.xlu1 %438 }
 0x10a   : > { %v457_v62 = vadd.f32 %v441_v7, %v1421_v23  ;;  %v456_v3 = vadd.f32 %v439_v61, %v1478_v56  ;;  %v566_v21 = vadd.f32 %v1515_v48, %v538_v47  ;;  %v565_v63 = vadd.f32 %v1541_v37, %v537_v52 }
 0x10c   : > { %v542_v4 = vadd.f32 %v1488_v60, %v457_v62  ;;  %v541_v18 = vadd.f32 %v1508_v28, %v456_v3  ;;  %v1689_v60 = vld [vmem:[%s1792_s2 + $0x8] ss:$0 sm:$0xff]  ;;  %v1818_v3 = vld [vmem:[#allocation2_spill] sm:$0xff] }
 0x10d   : > { %v598_v10 = vpop.permute.xlu0 %597  ;;  %v596_v19 = vpop.permute.xlu1 %595  ;;  %v794_v9 = vmul.f32 %v1689_v60, %v459_v27 }
 0x10e   : > { %v620_v20 = vadd.f32 %v598_v10, %v564_v26  ;;  %v619_v49 = vadd.f32 %v596_v19, %v563_v14  ;;  %v570_v45 = vadd.f32 %v1549_v33, %v542_v4  ;;  %v569_v23 = vadd.f32 %v1564_v8, %v541_v18  ;;  %v1820_v4 = vld [vmem:[#allocation3_spill] sm:$0xff] }
 0x10f   : > { %v795_v33 = vmul.f32 %v1689_v60, %v1328_v39  ;;  %v1815_v8 = vunpack.c.l.bf16 %v1360_v51  ;;  %v793_v14 = vmul.f32 %v1689_v60, %v1303_v24  ;;  %v1816_v39 = vunpack.c.l.bf16 %v1429_v34 }
 0x110   : > { %v704_v56 = vadd.f32 %v1524_v53, %v620_v20  ;;  %v703_v48 = vadd.f32 %v1531_v40, %v619_v49  ;;  %v1817_v34 = vunpack.c.l.bf16 %v1319_v32  ;;  %v1819_v32 = vunpack.c.l.bf16 %v1818_v3 }
 0x111   : > { %v606_v28 = vpop.permute.xlu0 %605  ;;  %v604_v37 = vpop.permute.xlu1 %603  ;;  %v796_v53 = vmul.f32 %v1689_v60, %v1815_v8  ;;  %v804_v51 = vmul.f32 %v1689_v60, %v1816_v39  ;;  %v828_v57 = vrot.slane %v795_v33, 1  ;;  %v825_v47 = vrot.slane %v793_v14, 1  ;;  %v1824_v14 = vld [vmem:[#allocation5_spill] sm:$0xff] }
 0x112   : > { %v624_v0 = vadd.f32 %v606_v28, %v568_v17  ;;  %v623_v46 = vadd.f32 %v604_v37, %v567_v44  ;;  %v725_v16 = vadd.f32 %v1573_v11, %v704_v56  ;;  %v724_v15 = vadd.f32 %v716_v22, %v703_v48  ;;  %v1822_v28 = vld [vmem:[#allocation7_spill] sm:$0xff] }
 0x113   : > { %v803_v11 = vmul.f32 %v1689_v60, %v1431_v35  ;;  %v829_v31 = vrot.slane %v796_v53, 1  ;;  %v801_v35 = vmul.f32 %v1689_v60, %v1310_v29  ;;  %v802_v43 = vmul.f32 %v1689_v60, %v1817_v34 }
 0x114   : > { %v708_v40 = vadd.f32 %v1534_v41, %v624_v0  ;;  %v707_v58 = vadd.f32 %v1553_v59, %v623_v46  ;;  %v799_v29 = vmul.f32 %v1689_v60, %v1312_v30  ;;  %v1821_v18 = vunpack.c.l.bf16 %v1820_v4 }
 0x115   : > { %v602_v12 = vpop.permute.xlu0 %601  ;;  %v600_v26 = vpop.permute.xlu1 %599  ;;  %v840_v52 = vrot.slane %v803_v11, 1  ;;  %v838_v22 = vrot.slane %v802_v43, 1  ;;  %v830_v20 = vsel %vm502_vm0, %v828_v57, %v829_v31  ;;  %v1825_v11 = vld [vmem:[#allocation4_spill] sm:$0xff] }
 0x116   : > { %v622_v54 = vadd.f32 %v602_v12, %v566_v21  ;;  %v621_v55 = vadd.f32 %v600_v26, %v565_v63  ;;  %v729_v41 = vadd.f32 %v1595_v1, %v708_v40  ;;  %v728_v59 = vadd.f32 %v1606_v25, %v707_v58  ;;  %v1823_v12 = vld [vmem:[#allocation6_spill] sm:$0xff] }
 0x117   : > { %v826_v1 = vrot.slane %v794_v9, 1  ;;  %v841_v25 = vrot.slane %v804_v51, 1  ;;  %v800_v21 = vmul.f32 %v1689_v60, %v1819_v32  ;;  %v797_v63 = vmul.f32 %v1689_v60, %v1326_v38 }
 0x118   : > { %v706_v24 = vadd.f32 %v1567_v5, %v622_v54  ;;  %v705_v27 = vadd.f32 %v1583_v13, %v621_v55  ;;  %v371_v13 = vld [vmem:[%s1580_s16 + $0x4] sm:$0x3]  ;;  %v798_v10 = vmul.f32 %v1689_v60, %v1821_v18  ;;  %v834_v0 = vrot.slane %v799_v29, 1 }
 0x119   : > { %v610_v17 = vpop.permute.xlu0 %609  ;;  %v608_v44 = vpop.permute.xlu1 %607  ;;  %v827_v49 = vsel %vm502_vm0, %v825_v47, %v826_v1  ;;  %v835_v46 = vrot.slane %v800_v21, 1  ;;  %v842_v40 = vsel %vm502_vm0, %v840_v52, %v841_v25  ;;  %v805_v9 = vmul.f32 %v1689_v60, %v1824_v14 }
 0x11a   : > { %v626_v7 = vadd.f32 %v610_v17, %v570_v45  ;;  %v625_v61 = vadd.f32 %v608_v44, %v569_v23  ;;  %v727_v62 = vadd.f32 %v1614_v50, %v706_v24  ;;  %v726_v5 = vadd.f32 %v1618_v42, %v705_v27 }
 0x11b   : > { %v837_v42 = vrot.slane %v801_v35, 1  ;;  %v788_v23 = vunpack.c.l.bf16 %v371_v13  ;;  %v832_v33 = vrot.slane %v798_v10, 1  ;;  %v1826_v39 = vunpack.c.l.bf16 %v1825_v11 }
 0x11c   : > { %v710_v19 = vadd.f32 %v1590_v2, %v626_v7  ;;  %v709_v50 = vadd.f32 %v1602_v6, %v625_v61  ;;  %v1130_v2 = vld [vmem:[%s1793_s3] ss:$0 sm:$0xff]  ;;  %v831_v6 = vrot.slane %v797_v63, 1  ;;  %v836_v24 = vsel %vm502_vm0, %v834_v0, %v835_v46 }
 0x11d   : > { %v759_v30 = vpop.permute.xlu0 %758  ;;  %v757_v45 = vpop.permute.xlu1 %756  ;;  %v839_v58 = vsel %vm502_vm0, %v837_v42, %v838_v22  ;;  %v808_v26 = vmul.f32 %v1689_v60, %v788_v23  ;;  %v806_v51 = vmul.f32 %v1689_v60, %v1826_v39  ;;  %v843_v25 = vrot.slane %v805_v9, 1 }
 0x11e   : > { %v781_v56 = vadd.f32 %v759_v30, %v725_v16  ;;  %v780_v48 = vadd.f32 %v757_v45, %v724_v15  ;;  %v731_v38 = vadd.f32 %v1626_v36, %v710_v19  ;;  %v730_v37 = vadd.f32 %v1822_v28, %v709_v50 }
 0x11f   : > { %v807_v36 = vmul.f32 %v1689_v60, %v1823_v12  ;;  %v833_v27 = vsel %vm502_vm0, %v831_v6, %v832_v33  ;;  %v847_v52 = vrot.slane %v808_v26, 1  ;;  %v844_v7 = vrot.slane %v806_v51, 1 }
 0x120   : > { %v858_v8 = vadd.f32 %v830_v20, %v781_v56  ;;  %v857_v53 = vadd.f32 %v827_v49, %v780_v48 }
 0x121   : > { %v767_v16 = vpop.permute.xlu0 %766  ;;  %v765_v15 = vpop.permute.xlu1 %764  ;;  %v846_v1 = vrot.slane %v807_v36, 1  ;;  %v845_v4 = vsel %vm502_vm0, %v843_v25, %v844_v7 }
 0x122   : > { %v785_v54 = vadd.f32 %v767_v16, %v729_v41  ;;  %v784_v55 = vadd.f32 %v765_v15, %v728_v59  ;;  %v872_v57 = vadd.f32 %v1130_v2, %v857_v53  ;;  %v873_v31 = vadd.f32 %v1130_v2, %v858_v8 }
 0x123   : > { %v848_v21 = vsel %vm502_vm0, %v846_v1, %v847_v52 }
 0x124   : > { %v862_v35 = vadd.f32 %v842_v40, %v785_v54  ;;  %v861_v34 = vadd.f32 %v839_v58, %v784_v55  ;;  %v880_v43 = vmax.f32 %v872_v57, 0.0  ;;  %v881_v17 = vmax.f32 %v873_v31, 0.0 }
 0x125   : > { %v763_v44 = vpop.permute.xlu0 %762  ;;  %v761_v47 = vpop.permute.xlu1 %760 }
 0x126   : > { %v783_v60 = vadd.f32 %v763_v44, %v727_v62  ;;  %v782_v41 = vadd.f32 %v761_v47, %v726_v5  ;;  %v1145_v59 = vpack.c.bf16 %v881_v17, %v880_v43  ;;  %v876_v61 = vadd.f32 %v1130_v2, %v861_v34 }
 0x127   : > { %v877_v13 = vadd.f32 %v1130_v2, %v862_v35 }
 0x128   : > { %v860_v29 = vadd.f32 %v836_v24, %v783_v60  ;;  %v859_v3 = vadd.f32 %v833_v27, %v782_v41  ;;  %1156 = vmatprep.mubr.msk.bf16.mxu0 %vm924_vm2, %v1145_v59  ;;  %v884_v32 = vmax.f32 %v876_v61, 0.0 }
 0x129   : > { %v771_v63 = vpop.permute.xlu0 %770  ;;  %v769_v18 = vpop.permute.xlu1 %768  ;;  %v885_v10 = vmax.f32 %v877_v13, 0.0 }
 0x12a   : > { %v875_v19 = vadd.f32 %v1130_v2, %v860_v29  ;;  %v874_v50 = vadd.f32 %v1130_v2, %v859_v3  ;;  %v787_v42 = vadd.f32 %v771_v63, %v731_v38  ;;  %v786_v62 = vadd.f32 %v769_v18, %v730_v37  ;;  %v1131_v38 = vld [vmem:[%s1795_s5] ss:$0 sm:$0xff] }
 0x12b   : > { %v1147_v5 = vpack.c.bf16 %v885_v10, %v884_v32 }
 0x12c   : > { %v883_v22 = vmax.f32 %v875_v19, 0.0  ;;  %v882_v20 = vmax.f32 %v874_v50, 0.0  ;;  %v864_v30 = vadd.f32 %v848_v21, %v787_v42  ;;  %v863_v49 = vadd.f32 %v845_v4, %v786_v62 }
 0x12d   : > { %1160 = vmatprep.mubr.msk.bf16.mxu1 %vm924_vm2, %v1147_v5 }
 0x12e   : > { %v1146_v45 = vpack.c.bf16 %v883_v22, %v882_v20  ;;  %v879_v23 = vadd.f32 %v1130_v2, %v864_v30  ;;  %v878_v56 = vadd.f32 %v1130_v2, %v863_v49 }
 0x130   : > { %v887_v48 = vmax.f32 %v879_v23, 0.0  ;;  %v886_v28 = vmax.f32 %v878_v56, 0.0  ;;  %1157 = vmatmul.mubr.msk.bf16.vlgmr.msra.gmra.mrb[0].mxu0 %vm924_vm2, %v1146_v45 }
 0x132   : > { %v1148_v0 = vpack.c.bf16 %v887_v48, %v886_v28 }
 0x134   : > { %1161 = vmatmul.mubr.msk.bf16.vlgmr.msra.gmra.mrb[0].mxu1 %vm924_vm2, %v1148_v0 }
 0x203   : > { %v1158_v37 = vpop.f32.mrb[0].mxu0 }
 0x204   : > { %v984_v46 = vadd.f32 %v1158_v37, %v1131_v38  ;;  %v975_v6 = vpop.f32.mrb[1].mxu0 }
 0x205   : > { %v976_v33 = vadd.f32 %v1131_v38, %v975_v6  ;;  %v1159_v2 = vpop.f32.mrb[2].mxu0 }
 0x206   : > { %v1008_v8 = vmax.f32 %v984_v46, 0.0  ;;  %v987_v53 = vadd.f32 %v1159_v2, %v1131_v38  ;;  %v978_v40 = vpop.f32.mrb[3].mxu0 }
 0x207   : > { %v1006_v58 = vmax.f32 %v976_v33, 0.0  ;;  %v979_v16 = vadd.f32 %v1131_v38, %v978_v40  ;;  %v1162_v15 = vpop.f32.mrb[0].mxu1 }
 0x208   : > { %v1016_v12 = vpack.c.bf16 %v1008_v8, %v1008_v8  ;;  %v1009_v36 = vmax.f32 %v987_v53, 0.0  ;;  %v1000_v26 = vadd.f32 %v1162_v15, %v1131_v38  ;;  %v991_v14 = vpop.f32.mrb[1].mxu1 }
 0x209   : > { %v1014_v9 = vpack.c.bf16 %v1006_v58, %v1006_v58  ;;  %v1007_v11 = vmax.f32 %v979_v16, 0.0  ;;  %v992_v39 = vadd.f32 %v1131_v38, %v991_v14  ;;  %v1163_v51 = vpop.f32.mrb[2].mxu1 }
 0x20a   : > { %1025 = vst.msk [vmem:[%s1763_s9 + $0x8] sm:$0xf] %vm1022_vm3, %v1016_v12  ;;  %v1017_v54 = vpack.c.bf16 %v1009_v36, %v1009_v36  ;;  %v1012_v55 = vmax.f32 %v1000_v26, 0.0  ;;  %v1003_v57 = vadd.f32 %v1163_v51, %v1131_v38  ;;  %v994_v31 = vpop.f32.mrb[3].mxu1 }
 0x20b   : > { %1023 = vst.msk [vmem:[%s1763_s9] sm:$0xf] %vm1022_vm3, %v1014_v9  ;;  %v1015_v24 = vpack.c.bf16 %v1007_v11, %v1007_v11  ;;  %v1010_v27 = vmax.f32 %v992_v39, 0.0  ;;  %v995_v35 = vadd.f32 %v1131_v38, %v994_v31 }
 0x20c   : > { %1026 = vst.msk [vmem:[%s1763_s9 + $0xc] sm:$0xf] %vm1022_vm3, %v1017_v54  ;;  %v1020_v34 = vpack.c.bf16 %v1012_v55, %v1012_v55  ;;  %v1013_v43 = vmax.f32 %v1003_v57, 0.0 }
 0x20d   : > { %1024 = vst.msk [vmem:[%s1763_s9 + $0x4] sm:$0xf] %vm1022_vm3, %v1015_v24  ;;  %v1018_v17 = vpack.c.bf16 %v1010_v27, %v1010_v27  ;;  %v1011_v44 = vmax.f32 %v995_v35, 0.0 }
 0x20e   : > { %1029 = vst.msk [vmem:[%s1763_s9 + $0x18] sm:$0xf] %vm1022_vm3, %v1020_v34  ;;  %v1021_v47 = vpack.c.bf16 %v1013_v43, %v1013_v43 }
 0x20f   : > { %1027 = vst.msk [vmem:[%s1763_s9 + $0x10] sm:$0xf] %vm1022_vm3, %v1018_v17  ;;  %v1019_v1 = vpack.c.bf16 %v1011_v44, %v1011_v44 }
 0x210   : > { %1030 = vst.msk [vmem:[%s1763_s9 + $0x1c] sm:$0xf] %vm1022_vm3, %v1021_v47 }
 0x211   : > { %1028 = vst.msk [vmem:[%s1763_s9 + $0x14] sm:$0xf] %vm1022_vm3, %v1019_v1 }
 0x212 PF: > { %s16_s23 = sadd.s32 1, %s1216_s23   ;;  %s1827_s21 = smov %s1212_s22 }
 0x213   : > { %p13_p7 = scmp.ge.s32.totalorder %s16_s23, 4   ;;  %s1828_s22 = smov %s1830_s24 }
 0x215   :  { %15 = sbr.rel (!%p13_p7) target bundleno = 2 (0x2), region = 77 }

// kernel: learning_to_downsample.5
= control target key start
LH: loop header
LB: loop body
LE: loop exit
PB: predicated region body
PF: predicated region fallthrough
CT: control target
= control target key end

     0   :  { %s910_s21 = smov 0   ;;  %s912_s22 = smov 0   ;;  %s1037_s0 = inlined_call_operand.vmem [shape: bf16[16,2,8,32], index: 0, kind: input, shape index: {}, may-alias: {0,1}]   ;;  %s1038_s1 = inlined_call_operand.vmem [shape: bf16[16,2,8,32], index: 1, kind: input, shape index: {}, may-alias: {0,1}]   ;;  %s1039_s2 = inlined_call_operand.vmem [shape: f32[9,16], index: 2, kind: input, shape index: {}]   ;;  %s1040_s3 = inlined_call_operand.vmem [shape: f32[1,16], index: 3, kind: input, shape index: {}]   ;;  %s1041_s4 = inlined_call_operand.vmem [shape: bf16[16,32], index: 4, kind: input, shape index: {}]   ;;  %s1042_s5 = inlined_call_operand.vmem [shape: f32[1,32], index: 5, kind: input, shape index: {}]   ;;  %s1043_s6 = inlined_call_operand.vmem [shape: bf16[8,4,32], index: 6, kind: output, shape index: {}]  }
   0x1   :  { %s914_s23 = smov 0  }
   0x2 LB: > { %s28_s24 = sadd.s32 1, %s864_s22  ;;  %p767_p0 = scmp.ge.s32.totalorder %s868_s23, 1  ;;  %s868_s23 = sphi %s914_s23, %s16_s23   ;;  %s864_s22 = sphi %s912_s22, %s1045_s22   ;;  %s860_s21 = sphi %s910_s21, %s1044_s21  }
   0x3   : > { %p30_p1 = scmp.ge.s32.totalorder %s28_s24, 2  ;;  %p262_p2 = scmp.lt.s32.totalorder %s868_s23, 3 }
   0x5   : > { %s1047_s24 = smov (%p30_p1, %s28_s24), 0  ;;  %p263_p3 = pnand %p767_p0, %p262_p2 }
   0x6   : > { %v353_v0 = vlaneseq (!%p263_p3)  ;;  %v935_v2 = vld [vmem:[%s1039_s2] sm:$0xff] (!%p263_p3)  ;;  %s870_s27 = smov (!%p263_p3), 16   ;;  %s786_s28 = sshll.u32 (!%p263_p3), %s860_s21, 3  ;;  %v872_v37 = vmov (!%p263_p3), 0.0   ;;  %vm873_vm0 = vmmov (!%p263_p3), 0   ;;  %vm617_vm1 = vcmask (!%p263_p3), 130048  }
   0x7   : > { %266 = sbr.rel (%p263_p3) target bundleno = 503 (0x1f7), region = 44  ;;  %p308_p4 = scmp.lt.s32.totalorder (!%p263_p3), %s786_s28, 15  ;;  %v845_v36 = vld [vmem:[%s1041_s4] sm:$0xff] (!%p263_p3)   ;;  %810 = vmatprep.subr.bf16.mxu0 (!%p263_p3), %v872_v37  ;;  %812 = vmatprep.mubr.msk.bf16.mxu0 (!%p263_p3), %vm873_vm0, %v872_v37  ;;  %vm674_vm2 = vcmask (!%p263_p3), 254976  }
   0x8   : > { %v930_v1 = vshrl.u32 (!%p263_p3), %v353_v0, 7  ;;  %s319_s10 = sadd.s32 (!%p263_p3), 4, %s786_s28  ;;  %s871_s11 = smov (!%p263_p3), 112   ;;  %811 = vmatpush3.bf16.msra.mxu0 (!%p263_p3), %v845_v36 }
   0x9   : > { %p320_p5 = scmp.lt.s32.totalorder (!%p263_p3), %s319_s10, 15  ;;  %s775_s26 = sshll.u32 (!%p263_p3), %s860_s21, 2 }
   0xa   : > { %v367_v3 = vsub.s32 (!%p263_p3), 1, %v930_v1  ;;  %v439_v4 = vsub.s32 (!%p263_p3), 4, %v930_v1  ;;  %v508_v5 = vsub.s32 (!%p263_p3), 7, %v930_v1  ;;  %v399_v40 = vsub.s32 (!%p263_p3), 2, %v930_v1  ;;  %p331_p6 = scmp.lt.s32.totalorder (!%p263_p3), %s775_s26, 7 }
   0xb   : > { %v355_v41 = vsub.s32 (!%p263_p3), 0, %v930_v1  ;;  %v427_v44 = vsub.s32 (!%p263_p3), 3, %v930_v1  ;;  %v471_v45 = vsub.s32 (!%p263_p3), 5, %v930_v1  ;;  %v496_v59 = vsub.s32 (!%p263_p3), 6, %v930_v1 }
   0xc   : > { %v368_v6 = vrot.slane (!%p263_p3), %v935_v2, %v367_v3  ;;  %v509_v7 = vrot.slane (!%p263_p3), %v935_v2, %v508_v5  ;;  %v440_v8 = vrot.slane (!%p263_p3), %v935_v2, %v439_v4  ;;  %v400_v42 = vrot.slane (!%p263_p3), %v935_v2, %v399_v40 }
   0xd   : > { %v356_v43 = vrot.slane (!%p263_p3), %v935_v2, %v355_v41  ;;  %v428_v50 = vrot.slane (!%p263_p3), %v935_v2, %v427_v44  ;;  %v472_v51 = vrot.slane (!%p263_p3), %v935_v2, %v471_v45 }
   0xe   : > { %370 = vrot.lane.b32.xlu0 %v368_v6, %s870_s27  ;;  %511 = vrot.lane.b32.xlu1 %v509_v7, %s870_s27  ;;  %s309_s29 = scalar_select %p308_p4, %s786_s28, 15 }
   0xf   : > { %s1049_s10 = smov (!%p320_p5, %s319_s10), 15  ;;  %s1051_s26 = smov (!%p331_p6, %s775_s26), 7 }
  0x10   : > { %s787_s30 = sshll.u32 %s309_s29, 3  ;;  %s788_s12 = sshll.u32 %s1049_s10, 3 }
  0x11   : > { %s312_s9 = scalar_lea.vmem %s1037_s0, %s787_s30  ;;  %s324_s15 = scalar_lea.vmem %s1038_s1, %s788_s12 }
  0x12   : > { %442 = vrot.lane.b32.xlu0 %v440_v8, %s870_s27  ;;  %v805_v9 = vld [vmem:[%s312_s9 + $0x8] sm:$0xff]   ;;  %v790_v10 = vld [vmem:[%s312_s9] sm:$0xff]   ;;  %v807_v13 = vld [vmem:[%s312_s9 + $0x18] sm:$0xff]   ;;  %s776_s29 = sshll.u32 %s1051_s26, 1 }
  0x13   : > { %v947_v11 = vunpack.c.l.bf16 %v805_v9  ;;  %v791_v12 = vunpack.c.l.bf16 %v790_v10  ;;  %v806_v14 = vld [vmem:[%s312_s9 + $0x10] sm:$0xff]   ;;  %v950_v18 = vunpack.c.l.bf16 %v807_v13  ;;  %v796_v20 = vunpack.c.h.bf16 %v805_v9  ;;  %v346_v32 = vld [vmem:[%s324_s15] sm:$0xf]  ;;  %s334_s8 = scalar_lea.vmem %s1043_s6, %s776_s29 }
  0x14   : > { %v952_v19 = vunpack.c.l.bf16 %v806_v14  ;;  %v792_v21 = vunpack.c.h.bf16 %v790_v10  ;;  %v960_v27 = vunpack.c.h.bf16 %v807_v13  ;;  %v962_v28 = vunpack.c.h.bf16 %v806_v14 }
  0x15   : > { %v975_v35 = vunpack.c.l.bf16 %v346_v32  ;;  %v402_v46 = vmul.f32 %v947_v11, %v400_v42  ;;  %v401_v47 = vmul.f32 %v791_v12, %v400_v42  ;;  %v358_v48 = vmul.f32 %v947_v11, %v356_v43 }
  0x16   : > { %v357_v49 = vmul.f32 %v791_v12, %v356_v43  ;;  %v404_v54 = vmul.f32 %v950_v18, %v400_v42  ;;  %v403_v55 = vmul.f32 %v952_v19, %v400_v42  ;;  %v360_v58 = vmul.f32 %v950_v18, %v356_v43 }
  0x17   : > { %v410_v52 = vrot.slane %v402_v46, 1  ;;  %v409_v53 = vrot.slane %v401_v47, 1  ;;  %v359_v62 = vmul.f32 %v952_v19, %v356_v43  ;;  %v429_v63 = vmul.f32 %v792_v21, %v428_v50 }
  0x18   : > { %v430_v0 = vmul.f32 %v796_v20, %v428_v50  ;;  %v474_v3 = vmul.f32 %v796_v20, %v472_v51  ;;  %v473_v4 = vmul.f32 %v792_v21, %v472_v51  ;;  %v412_v7 = vrot.slane %v404_v54, 1 }
  0x19   : > { %v411_v8 = vrot.slane %v403_v55, 1  ;;  %v497_v13 = vrot.slane %v935_v2, %v496_v59 }
  0x1b   : > { %v501_v44 = vmul.f32 %v497_v13, %v975_v35 }
  0x80   : > { %v371_v15 = vpop.permute.xlu0 %370  ;;  %v512_v29 = vpop.permute.xlu1 %511 }
  0x81   : > { %v374_v16 = vmul.f32 %v947_v11, %v371_v15  ;;  %v373_v17 = vmul.f32 %v791_v12, %v371_v15  ;;  %v376_v23 = vmul.f32 %v950_v18, %v371_v15  ;;  %v375_v24 = vmul.f32 %v952_v19, %v371_v15 }
  0x82   : > { %v515_v33 = vmul.f32 %v952_v19, %v512_v29  ;;  %v514_v34 = vmul.f32 %v947_v11, %v512_v29  ;;  %v517_v38 = vmul.f32 %v512_v29, %v975_v35  ;;  %v516_v39 = vmul.f32 %v950_v18, %v512_v29  ;;  %v777_v29 = vld [vmem:[%s1039_s2 + $0x8] ss:$0 sm:$0xff] }
  0x83   : > { %383 = vrot.lane.b32.xlu0 %v374_v16, %s871_s11  ;;  %381 = vrot.lane.b32.xlu1 %v373_v17, %s871_s11  ;;  %v432_v12 = vmul.f32 %v960_v27, %v428_v50  ;;  %v431_v17 = vmul.f32 %v962_v28, %v428_v50  ;;  %v543_v37 = vmul.f32 %v952_v19, %v777_v29 }
  0x84   : > { %v443_v22 = vpop.permute.xlu0 %442 }
  0x85   : > { %v446_v25 = vmul.f32 %v796_v20, %v443_v22  ;;  %v445_v26 = vmul.f32 %v792_v21, %v443_v22  ;;  %v448_v30 = vmul.f32 %v960_v27, %v443_v22  ;;  %v447_v31 = vmul.f32 %v962_v28, %v443_v22 }
  0x86   : > { %v482_v22 = vrot.slane %v474_v3, 1  ;;  %v476_v20 = vmul.f32 %v960_v27, %v472_v51  ;;  %v498_v27 = vmul.f32 %v947_v11, %v497_v13 }
  0x87   : > { %387 = vrot.lane.b32.xlu0 %v376_v23, %s871_s11  ;;  %385 = vrot.lane.b32.xlu1 %v375_v24, %s871_s11  ;;  %v481_v23 = vrot.slane %v473_v4, 1 }
  0x88   : > { %v484_v40 = vrot.slane %v476_v20, 1 }
  0x8b   : > { %455 = vrot.lane.b32.xlu0 %v446_v25, %s871_s11  ;;  %453 = vrot.lane.b32.xlu1 %v445_v26, %s871_s11  ;;  %v475_v26 = vmul.f32 %v962_v28, %v472_v51  ;;  %v544_v51 = vmul.f32 %v950_v18, %v777_v29 }
  0x8d   : > { %v483_v41 = vrot.slane %v475_v26, 1  ;;  %v552_v3 = vrot.slane %v544_v51, 1 }
  0x8f   : > { %459 = vrot.lane.b32.xlu0 %v448_v30, %s871_s11  ;;  %457 = vrot.lane.b32.xlu1 %v447_v31, %s871_s11  ;;  %v499_v31 = vmul.f32 %v952_v19, %v497_v13  ;;  %v545_v19 = vmul.f32 %v777_v29, %v975_v35 }
  0x91   : > { %v553_v35 = vrot.slane %v545_v19, 1 }
  0x93   : > { %524 = vrot.lane.b32.xlu0 %v515_v33, %s871_s11  ;;  %522 = vrot.lane.b32.xlu1 %v514_v34, %s871_s11 }
  0x97   : > { %528 = vrot.lane.b32.xlu0 %v517_v38, %s871_s11  ;;  %526 = vrot.lane.b32.xlu1 %v516_v39, %s871_s11  ;;  %v542_v38 = vmul.f32 %v947_v11, %v777_v29  ;;  %v779_v29 = vld [vmem:[%s1042_s5] ss:$0 sm:$0xff] }
  0x99   : > { %v550_v50 = vrot.slane %v542_v38, 1 }
  0xf5   : > { %v384_v56 = vpop.permute.xlu0 %383  ;;  %v382_v57 = vpop.permute.xlu1 %381 }
  0xf6   : > { %v394_v60 = vadd.f32 %v384_v56, %v358_v48  ;;  %v393_v61 = vadd.f32 %v382_v57, %v357_v49  ;;  %v500_v48 = vmul.f32 %v950_v18, %v497_v13  ;;  %v551_v49 = vrot.slane %v543_v37, 1 }
  0xf8   : > { %v418_v5 = vadd.f32 %v410_v52, %v394_v60  ;;  %v417_v6 = vadd.f32 %v409_v53, %v393_v61  ;;  %v778_v60 = vld [vmem:[%s1040_s3] ss:$0 sm:$0xff]  ;;  %v874_v61 = vmov 1983009808  }
  0xf9   : > { %v388_v9 = vpop.permute.xlu0 %387  ;;  %v386_v10 = vpop.permute.xlu1 %385 }
  0xfa   : > { %v396_v14 = vadd.f32 %v388_v9, %v360_v58  ;;  %v395_v15 = vadd.f32 %v386_v10, %v359_v62  ;;  %v433_v16 = vadd.f32 %v429_v63, %v417_v6  ;;  %v434_v25 = vadd.f32 %v430_v0, %v418_v5 }
  0xfb   : > { %v597_v62 = vunpack.c.l.s4 %v874_v61 }
  0xfc   : > { %v420_v21 = vadd.f32 %v412_v7, %v396_v14  ;;  %v419_v24 = vadd.f32 %v411_v8, %v395_v15 }
  0xfd   : > { %v456_v30 = vpop.permute.xlu0 %455  ;;  %v454_v2 = vpop.permute.xlu1 %453  ;;  %v598_v9 = vunpack.c.0.s8 %v597_v62 }
  0xfe   : > { %v466_v32 = vadd.f32 %v456_v30, %v434_v25  ;;  %v465_v33 = vadd.f32 %v454_v2, %v433_v16  ;;  %v436_v34 = vadd.f32 %v432_v12, %v420_v21  ;;  %v435_v36 = vadd.f32 %v431_v17, %v419_v24 }
 0x100   : > { %v490_v39 = vadd.f32 %v482_v22, %v466_v32  ;;  %v489_v28 = vadd.f32 %v481_v23, %v465_v33  ;;  %v601_v22 = vsub.s32 %v598_v9, %v930_v1 }
 0x101   : > { %v460_v42 = vpop.permute.xlu0 %459  ;;  %v458_v43 = vpop.permute.xlu1 %457 }
 0x102   : > { %v468_v45 = vadd.f32 %v460_v42, %v436_v34  ;;  %v467_v46 = vadd.f32 %v458_v43, %v435_v36  ;;  %v503_v47 = vadd.f32 %v499_v31, %v490_v39  ;;  %v502_v53 = vadd.f32 %v498_v27, %v489_v28 }
 0x104   : > { %v492_v11 = vadd.f32 %v484_v40, %v468_v45  ;;  %v491_v52 = vadd.f32 %v483_v41, %v467_v46 }
 0x105   : > { %v525_v54 = vpop.permute.xlu0 %524  ;;  %v523_v55 = vpop.permute.xlu1 %522 }
 0x106   : > { %v535_v56 = vadd.f32 %v525_v54, %v503_v47  ;;  %v534_v57 = vadd.f32 %v523_v55, %v502_v53  ;;  %v505_v58 = vadd.f32 %v501_v44, %v492_v11  ;;  %v504_v59 = vadd.f32 %v500_v48, %v491_v52 }
 0x108   : > { %v559_v63 = vadd.f32 %v551_v49, %v535_v56  ;;  %v558_v0 = vadd.f32 %v550_v50, %v534_v57 }
 0x109   : > { %v529_v18 = vpop.permute.xlu0 %528  ;;  %v527_v4 = vpop.permute.xlu1 %526 }
 0x10a   : > { %v570_v5 = vadd.f32 %v778_v60, %v559_v63  ;;  %v569_v6 = vadd.f32 %v778_v60, %v558_v0  ;;  %v537_v7 = vadd.f32 %v529_v18, %v505_v58  ;;  %v536_v8 = vadd.f32 %v527_v4, %v504_v59 }
 0x10c   : > { %v574_v10 = vmax.f32 %v570_v5, 0.0  ;;  %v573_v12 = vmax.f32 %v569_v6, 0.0  ;;  %v561_v13 = vadd.f32 %v553_v35, %v537_v7  ;;  %v560_v14 = vadd.f32 %v552_v3, %v536_v8 }
 0x10e   : > { %v780_v15 = vpack.c.bf16 %v574_v10, %v573_v12  ;;  %v572_v16 = vadd.f32 %v778_v60, %v561_v13  ;;  %v571_v17 = vadd.f32 %v778_v60, %v560_v14 }
 0x110   : > { %v576_v23 = vmax.f32 %v572_v16, 0.0  ;;  %v575_v20 = vmax.f32 %v571_v17, 0.0  ;;  %v602_v24 = vrot.slane %v780_v15, %v601_v22 }
 0x112   : > { %v781_v21 = vpack.c.bf16 %v576_v23, %v575_v20 }
 0x114   : > { %v609_v25 = vrot.slane %v781_v21, %v601_v22 }
 0x116   : > { %v610_v26 = vcombine.low %v602_v24, %v609_v25 }
 0x118   : > { %813 = vmatmul.mubr.msk.bf16.vlgmr.msra.gmra.mrb[0].mxu0 %vm617_vm1, %v610_v26 }
 0x1eb   : > { %v655_v30 = vpop.f32.mrb[0].mxu0 }
 0x1ec   : > { %v656_v2 = vadd.f32 %v779_v29, %v655_v30  ;;  %v814_v31 = vpop.f32.mrb[1].mxu0 }
 0x1ed   : > { %v658_v1 = vpop.f32.mrb[2].mxu0 }
 0x1ee   : > { %v662_v32 = vmax.f32 %v656_v2, 0.0  ;;  %v659_v33 = vadd.f32 %v779_v29, %v658_v1  ;;  %v815_v34 = vpop.f32.mrb[3].mxu0 }
 0x1f0   : > { %v666_v36 = vcombine.high %v662_v32, %v662_v32  ;;  %v670_v37 = vpack.c.bf16 %v662_v32, %v662_v32  ;;  %v663_v27 = vmax.f32 %v659_v33, 0.0 }
 0x1f2   : > { %v671_v38 = vpack.c.bf16 %v666_v36, %v666_v36  ;;  %675 = vst.msk [vmem:[%s334_s8] sm:$0x3] %vm674_vm2, %v670_v37  ;;  %v667_v39 = vcombine.high %v663_v27, %v663_v27  ;;  %v672_v28 = vpack.c.bf16 %v663_v27, %v663_v27 }
 0x1f4   : > { %676 = vst.msk [vmem:[%s334_s8 + $0x2] sm:$0x3] %vm674_vm2, %v671_v38  ;;  %v673_v40 = vpack.c.bf16 %v667_v39, %v667_v39  ;;  %677 = vst.msk [vmem:[%s334_s8 + $0x4] sm:$0x3] %vm674_vm2, %v672_v28 }
 0x1f6   : > { %678 = vst.msk [vmem:[%s334_s8 + $0x6] sm:$0x3] %vm674_vm2, %v673_v40 }
 0x1f7 PF: > { %s16_s23 = sadd.s32 1, %s868_s23   ;;  %s1044_s21 = smov %s864_s22 }
 0x1f8   : > { %p13_p7 = scmp.ge.s32.totalorder %s16_s23, 4   ;;  %s1045_s22 = smov %s1047_s24 }
 0x1fa   :  { %15 = sbr.rel (!%p13_p7) target bundleno = 2 (0x2), region = 77 }

</bundles_post_ra>
